<compile_context>
chip_gen: v7x
topology: tpu7x:2x2x1
jax: 0.10.0
libtpu: 0.0.40
codegen_flags: <defaults>
</compile_context>

<pallas_src>
import functools

import jax
import jax.numpy as jnp
from jax.experimental import pallas as pl
from jax.experimental.pallas import tpu as pltpu


def _round_up(x, m):
    return (x + m - 1) // m * m


def _shift_lanes(a, off):
    """result[..., i] = a[..., (i + off) % M] for a static integer offset.

    Implemented as two static lane slices + concat (unambiguous semantics).
    Circular wrap only ever lands on non-interior (masked) pixel positions.
    """
    m = a.shape[-1]
    off = off % m
    if off == 0:
        return a
    return jnp.concatenate([a[:, off:], a[:, :off]], axis=-1)


# ------------------------------------------------------------ fused loss kernel
def _fused_loss_kernel(x_ref, y_ref, m_ref, v_ref,
                       w1_ref, b1_ref, w2_ref, b2_ref,
                       out_ref, r1_ref, r2_ref, *, wp):
    mask = m_ref[...]                              # (1, P)   user mask, zero ring/tail
    vmask = v_ref[...]                             # (1, P)   interior validity (0/1)

    xm = x_ref[0] * mask                           # (Cin, P)
    ym = y_ref[0] * mask
    src = jnp.concatenate([xm, ym], axis=-1)       # (Cin, 2P)  pixels on lanes
    cin = src.shape[0]

    # 3x3 tap offsets on the flat padded-pixel axis.
    offsets = [(ki - 1) * wp + (kj - 1) for ki in range(3) for kj in range(3)]

    # ---- layer 1: im2col (tap-major rows) -> single MXU matmul --------------
    for t, off in enumerate(offsets):
        r1_ref[t * cin:(t + 1) * cin, :] = _shift_lanes(src, off)
    f1 = jnp.dot(w1_ref[...], r1_ref[...].astype(jnp.bfloat16),
                 preferred_element_type=jnp.float32)           # (C1, 2P)
    vboth = jnp.concatenate([vmask, vmask], axis=-1)            # (1, 2P)
    # Interior-masking makes f1 its own zero-padded layer-2 input.
    f1 = jnp.maximum(f1 + b1_ref[...], 0.0) * vboth
    c1 = f1.shape[0]

    # ---- layer 2 -------------------------------------------------------------
    for t, off in enumerate(offsets):
        r2_ref[t * c1:(t + 1) * c1, :] = _shift_lanes(f1, off)
    f2 = jnp.dot(w2_ref[...], r2_ref[...].astype(jnp.bfloat16),
                 preferred_element_type=jnp.float32)           # (C2, 2P)
    f2 = jnp.maximum(f2 + b2_ref[...], 0.0)

    # ---- fused squared-diff partial sums (interior pixels only) --------------
    p = mask.shape[-1]
    d1 = f1[:, :p] - f1[:, p:]                     # already interior-masked
    d2 = (f2[:, :p] - f2[:, p:]) * vmask
    sse1 = jnp.sum(d1 * d1)
    sse2 = jnp.sum(d2 * d2)

    out_ref[0, 0:1, :] = jnp.broadcast_to(sse1, (1, 128))
    out_ref[0, 1:2, :] = jnp.broadcast_to(sse2, (1, 128))


def _pick_block_batch(batch):
    # Keep >= 4 grid steps when possible (feeds both TCs / pipeline); otherwise 1.
    for nb in (8, 4, 2):
        if batch % nb == 0 and batch // nb >= 4:
            return nb
    return 1


# ------------------------------------------------------------------ host wrapper
def feature_recon_loss(x_nchw, y_nchw, mask_nchw, params, *, block_batch=None):
    (w1, b1), (w2, b2) = params                    # HWIO conv weights
    B, Cin, H, W = x_nchw.shape
    C1, C2 = w1.shape[-1], w2.shape[-1]
    Hp, Wp = H + 2, W + 2
    S = Hp * Wp
    Sp = _round_up(S, 128)                         # lane-padded flat image size
    nb = block_batch if block_batch is not None else _pick_block_batch(B)
    assert B % nb == 0
    G = B // nb
    P = nb * Sp                                    # pixels per branch per step
    PM = 2 * P                                     # x + y branches

    # ---- layout plumbing (host-side): zero-padded, flattened, lane-padded ----
    def prep(img):                                 # (B,Cin,H,W) -> (G,Cin,nb*Sp)
        z = jnp.pad(img.astype(jnp.float32), ((0, 0), (0, 0), (1, 1), (1, 1)))
        z = z.reshape(B, Cin, S)
        z = jnp.pad(z, ((0, 0), (0, 0), (0, Sp - S)))
        z = z.reshape(G, nb, Cin, Sp).transpose(0, 2, 1, 3).reshape(G, Cin, P)
        return z

    xk = prep(x_nchw)
    yk = prep(y_nchw)

    m2d = jnp.broadcast_to(mask_nchw.astype(jnp.float32), (1, 1, H, W))[0, 0]
    mpad = jnp.pad(m2d, ((1, 1), (1, 1))).reshape(1, S)
    mpad = jnp.pad(mpad, ((0, 0), (0, Sp - S)))
    mask_flat = jnp.tile(mpad, (1, nb))                            # (1, P)

    vpad = jnp.pad(jnp.ones((H, W), jnp.float32), ((1, 1), (1, 1))).reshape(1, S)
    vpad = jnp.pad(vpad, ((0, 0), (0, Sp - S)))
    vmask_flat = jnp.tile(vpad, (1, nb))                           # (1, P)

    # Weights: (Cout, 9*Cin) tap-major, pre-cast to bf16; biases (Cout, 1) f32.
    w1m = jnp.transpose(w1, (3, 0, 1, 2)).reshape(C1, 9 * Cin).astype(jnp.bfloat16)
    w2m = jnp.transpose(w2, (3, 0, 1, 2)).reshape(C2, 9 * C1).astype(jnp.bfloat16)
    b1c = b1.reshape(C1, 1).astype(jnp.float32)
    b2c = b2.reshape(C2, 1).astype(jnp.float32)

    # ---- VMEM budget derived from the actual (8,128)-padded footprint --------
    def vreg_pad(rows, cols, itemsize):
        srows = _round_up(rows, 16 if itemsize == 2 else 8)
        scols = _round_up(cols, 128)
        return srows * scols * itemsize

    vmem_est = (
        2 * 2 * vreg_pad(Cin, P, 4)                       # x, y (double buffered)
        + 2 * 2 * vreg_pad(1, P, 4)                       # mask, vmask
        + 2 * (vreg_pad(C1, 9 * Cin, 2) + vreg_pad(C2, 9 * C1, 2))   # weights
        + 2 * (vreg_pad(C1, 1, 4) + vreg_pad(C2, 1, 4))   # biases
        + 2 * vreg_pad(2, 128, 4)                         # out block
        + vreg_pad(9 * Cin, PM, 4) + vreg_pad(9 * C1, PM, 4)         # im2col scratches
    )
    vmem_limit = int(min(max(2 * vmem_est, 8 * 1024 * 1024), 64 * 1024 * 1024))

    flops = 4 * B * Sp * 9 * (Cin * C1 + C1 * C2)         # x & y, 2 flops/MAC
    bytes_accessed = int(4 * (xk.size + yk.size + mask_flat.size + vmask_flat.size
                              + b1c.size + b2c.size + G * 2 * 128)
                         + 2 * (w1m.size + w2m.size))

    kernel = functools.partial(_fused_loss_kernel, wp=Wp)

    partial_out = pl.pallas_call(
        kernel,
        out_shape=jax.ShapeDtypeStruct((G, 2, 128), jnp.float32),
        grid=(G,),
        in_specs=[
            pl.BlockSpec((1, Cin, P), lambda g: (g, 0, 0)),     # x  (padded-flat)
            pl.BlockSpec((1, Cin, P), lambda g: (g, 0, 0)),     # y
            pl.BlockSpec((1, P), lambda g: (0, 0)),             # user mask
            pl.BlockSpec((1, P), lambda g: (0, 0)),             # interior validity
            pl.BlockSpec((C1, 9 * Cin), lambda g: (0, 0)),      # w1 (bf16)
            pl.BlockSpec((C1, 1), lambda g: (0, 0)),            # b1
            pl.BlockSpec((C2, 9 * C1), lambda g: (0, 0)),       # w2 (bf16)
            pl.BlockSpec((C2, 1), lambda g: (0, 0)),            # b2
        ],
        out_specs=pl.BlockSpec((1, 2, 128), lambda g: (g, 0, 0)),
        scratch_shapes=[
            pltpu.VMEM((9 * Cin, PM), jnp.float32),             # layer-1 im2col
            pltpu.VMEM((9 * C1, PM), jnp.float32),              # layer-2 im2col
        ],
        compiler_params=pltpu.CompilerParams(
            dimension_semantics=("parallel",),
            vmem_limit_bytes=vmem_limit,
        ),
        cost_estimate=pl.CostEstimate(
            flops=flops, transcendentals=0, bytes_accessed=bytes_accessed),
    )(xk, yk, mask_flat, vmask_flat, w1m, b1c, w2m, b2c)

    sse1 = jnp.sum(partial_out[:, 0, 0])
    sse2 = jnp.sum(partial_out[:, 1, 0])
    mse1 = sse1 / (B * H * W * C1)
    mse2 = sse2 / (B * H * W * C2)
    return (mse1 + mse2) / 2.0


# ---------------------------------------------------------------- pure-JAX ref
def ref_loss(x_nchw, y_nchw, mask_nchw, params):
    def extract(inp):
        h = jnp.transpose(inp * mask_nchw, (0, 2, 3, 1))
        feats = []
        for w, b in params:
            h = jax.lax.conv_general_dilated(
                h, w, (1, 1), "SAME",
                dimension_numbers=("NHWC", "HWIO", "NHWC"),
                precision=jax.lax.Precision.HIGHEST) + b
            h = jnp.maximum(h, 0.0)
            feats.append(h)
        return feats

    xf = extract(x_nchw)
    yf = extract(y_nchw)
    loss = sum(jnp.mean((a - b) ** 2) for a, b in zip(xf, yf))
    return loss / len(xf)


if __name__ == "__main__":
    B, C, H, W = 2, 4, 16, 16
    C1, C2 = 8, 16

    key = jax.random.PRNGKey(0)
    k = jax.random.split(key, 7)
    x = jax.random.normal(k[0], (B, C, H, W), jnp.float32)
    y = jax.random.normal(k[1], (B, C, H, W), jnp.float32)
    mask = jax.random.bernoulli(k[2], 0.7, (1, 1, H, W)).astype(jnp.float32)

    # deterministic "feature extractor" parameters (HWIO layout)
    w1 = 0.1 * jax.random.normal(k[3], (3, 3, C, C1), jnp.float32)
    b1 = 0.1 * jax.random.normal(k[4], (C1,), jnp.float32)
    w2 = 0.1 * jax.random.normal(k[5], (3, 3, C1, C2), jnp.float32)
    b2 = 0.1 * jax.random.normal(k[6], (C2,), jnp.float32)
    params = ((w1, b1), (w2, b2))

    loss = jax.block_until_ready(feature_recon_loss(x, y, mask, params))
    ref = jax.block_until_ready(ref_loss(x, y, mask, params))
    # bf16 MXU operands w/ f32 accumulation vs f32-HIGHEST reference.
    assert jnp.allclose(loss, ref, rtol=3e-3, atol=1e-5), (loss, ref)
    print("KERNEL_OK")
</pallas_src>

<mosaic_0001>
module attributes {stable_mosaic.version = 11 : i64} {
  func.func @_fused_loss_kernel(%arg0: i32, %arg1: memref<1x4x384xf32, #tpu.memory_space<vmem>>, %arg2: memref<1x4x384xf32, #tpu.memory_space<vmem>>, %arg3: memref<1x384xf32, #tpu.memory_space<vmem>>, %arg4: memref<1x384xf32, #tpu.memory_space<vmem>>, %arg5: memref<8x36xbf16, #tpu.memory_space<vmem>>, %arg6: memref<8x1xf32, #tpu.memory_space<vmem>>, %arg7: memref<16x72xbf16, #tpu.memory_space<vmem>>, %arg8: memref<16x1xf32, #tpu.memory_space<vmem>>, %arg9: memref<1x2x128xf32, #tpu.memory_space<vmem>>, %arg10: memref<36x768xf32, #tpu.memory_space<vmem>>, %arg11: memref<72x768xf32, #tpu.memory_space<vmem>>) attributes {dimension_semantics = [#tpu.dimension_semantics<parallel>], iteration_bounds = array<i64: 2>, scalar_prefetch = 0 : i64, scratch_operands = 2 : i64, tpu.core_type = #tpu.core_type<tc>, window_params = [{transform_indices = @transform_0, window_bounds = array<i64: 1, 4, 384>}, {transform_indices = @transform_1, window_bounds = array<i64: 1, 4, 384>}, {pipeline_mode = #tpu.pipeline_mode<synchronous>, transform_indices = @transform_2, window_bounds = array<i64: 1, 384>}, {pipeline_mode = #tpu.pipeline_mode<synchronous>, transform_indices = @transform_3, window_bounds = array<i64: 1, 384>}, {pipeline_mode = #tpu.pipeline_mode<synchronous>, transform_indices = @transform_4, window_bounds = array<i64: 8, 36>}, {pipeline_mode = #tpu.pipeline_mode<synchronous>, transform_indices = @transform_5, window_bounds = array<i64: 8, 1>}, {pipeline_mode = #tpu.pipeline_mode<synchronous>, transform_indices = @transform_6, window_bounds = array<i64: 16, 72>}, {pipeline_mode = #tpu.pipeline_mode<synchronous>, transform_indices = @transform_7, window_bounds = array<i64: 16, 1>}, {transform_indices = @transform_8, window_bounds = array<i64: 1, 2, 128>}]} {
    %c0 = arith.constant 0 : index
    %c0_0 = arith.constant 0 : index
    %0 = vector.load %arg3[%c0, %c0_0] : memref<1x384xf32, #tpu.memory_space<vmem>>, vector<1x384xf32>
    %c0_1 = arith.constant 0 : index
    %c0_2 = arith.constant 0 : index
    %1 = vector.load %arg4[%c0_1, %c0_2] : memref<1x384xf32, #tpu.memory_space<vmem>>, vector<1x384xf32>
    %c0_3 = arith.constant 0 : index
    %c0_4 = arith.constant 0 : index
    %c0_5 = arith.constant 0 : index
    %2 = vector.load %arg1[%c0_3, %c0_4, %c0_5] : memref<1x4x384xf32, #tpu.memory_space<vmem>>, vector<1x4x384xf32>
    %3 = vector.shape_cast %2 : vector<1x4x384xf32> to vector<4x384xf32>
    %4 = vector.broadcast %0 : vector<1x384xf32> to vector<4x384xf32>
    %5 = arith.mulf %3, %4 : vector<4x384xf32>
    %c0_6 = arith.constant 0 : index
    %c0_7 = arith.constant 0 : index
    %c0_8 = arith.constant 0 : index
    %6 = vector.load %arg2[%c0_6, %c0_7, %c0_8] : memref<1x4x384xf32, #tpu.memory_space<vmem>>, vector<1x4x384xf32>
    %7 = vector.shape_cast %6 : vector<1x4x384xf32> to vector<4x384xf32>
    %8 = vector.broadcast %0 : vector<1x384xf32> to vector<4x384xf32>
    %9 = arith.mulf %7, %8 : vector<4x384xf32>
    %10 = tpu.concatenate %5, %9 in 1 : vector<4x384xf32>, vector<4x384xf32> -> vector<4x768xf32>
    %11 = vector.extract_strided_slice %10 {offsets = [0, 749], sizes = [4, 19], strides = [1, 1]} : vector<4x768xf32> to vector<4x19xf32>
    %12 = vector.extract_strided_slice %10 {offsets = [0, 0], sizes = [4, 749], strides = [1, 1]} : vector<4x768xf32> to vector<4x749xf32>
    %13 = tpu.concatenate %11, %12 in 1 : vector<4x19xf32>, vector<4x749xf32> -> vector<4x768xf32>
    %c0_9 = arith.constant 0 : index
    %c0_10 = arith.constant 0 : index
    %14 = vector.load %arg10[%c0_9, %c0_10] : memref<36x768xf32, #tpu.memory_space<vmem>>, vector<4x768xf32>
    tpu.vector_store %arg10[%c0_9, %c0_10], %13 {strides = array<i32>} : memref<36x768xf32, #tpu.memory_space<vmem>>, vector<4x768xf32>,
    %15 = vector.extract_strided_slice %10 {offsets = [0, 750], sizes = [4, 18], strides = [1, 1]} : vector<4x768xf32> to vector<4x18xf32>
    %16 = vector.extract_strided_slice %10 {offsets = [0, 0], sizes = [4, 750], strides = [1, 1]} : vector<4x768xf32> to vector<4x750xf32>
    %17 = tpu.concatenate %15, %16 in 1 : vector<4x18xf32>, vector<4x750xf32> -> vector<4x768xf32>
    %c4 = arith.constant 4 : index
    %c0_11 = arith.constant 0 : index
    %18 = vector.load %arg10[%c4, %c0_11] : memref<36x768xf32, #tpu.memory_space<vmem>>, vector<4x768xf32>
    tpu.vector_store %arg10[%c4, %c0_11], %17 {strides = array<i32>} : memref<36x768xf32, #tpu.memory_space<vmem>>, vector<4x768xf32>,
    %19 = vector.extract_strided_slice %10 {offsets = [0, 751], sizes = [4, 17], strides = [1, 1]} : vector<4x768xf32> to vector<4x17xf32>
    %20 = vector.extract_strided_slice %10 {offsets = [0, 0], sizes = [4, 751], strides = [1, 1]} : vector<4x768xf32> to vector<4x751xf32>
    %21 = tpu.concatenate %19, %20 in 1 : vector<4x17xf32>, vector<4x751xf32> -> vector<4x768xf32>
    %c8 = arith.constant 8 : index
    %c0_12 = arith.constant 0 : index
    %22 = vector.load %arg10[%c8, %c0_12] : memref<36x768xf32, #tpu.memory_space<vmem>>, vector<4x768xf32>
    tpu.vector_store %arg10[%c8, %c0_12], %21 {strides = array<i32>} : memref<36x768xf32, #tpu.memory_space<vmem>>, vector<4x768xf32>,
    %23 = vector.extract_strided_slice %10 {offsets = [0, 767], sizes = [4, 1], strides = [1, 1]} : vector<4x768xf32> to vector<4x1xf32>
    %24 = vector.extract_strided_slice %10 {offsets = [0, 0], sizes = [4, 767], strides = [1, 1]} : vector<4x768xf32> to vector<4x767xf32>
    %25 = tpu.concatenate %23, %24 in 1 : vector<4x1xf32>, vector<4x767xf32> -> vector<4x768xf32>
    %c12 = arith.constant 12 : index
    %c0_13 = arith.constant 0 : index
    %26 = vector.load %arg10[%c12, %c0_13] : memref<36x768xf32, #tpu.memory_space<vmem>>, vector<4x768xf32>
    tpu.vector_store %arg10[%c12, %c0_13], %25 {strides = array<i32>} : memref<36x768xf32, #tpu.memory_space<vmem>>, vector<4x768xf32>,
    %c16 = arith.constant 16 : index
    %c0_14 = arith.constant 0 : index
    %27 = vector.load %arg10[%c16, %c0_14] : memref<36x768xf32, #tpu.memory_space<vmem>>, vector<4x768xf32>
    tpu.vector_store %arg10[%c16, %c0_14], %10 {strides = array<i32>} : memref<36x768xf32, #tpu.memory_space<vmem>>, vector<4x768xf32>,
    %28 = vector.extract_strided_slice %10 {offsets = [0, 1], sizes = [4, 767], strides = [1, 1]} : vector<4x768xf32> to vector<4x767xf32>
    %29 = vector.extract_strided_slice %10 {offsets = [0, 0], sizes = [4, 1], strides = [1, 1]} : vector<4x768xf32> to vector<4x1xf32>
    %30 = tpu.concatenate %28, %29 in 1 : vector<4x767xf32>, vector<4x1xf32> -> vector<4x768xf32>
    %c20 = arith.constant 20 : index
    %c0_15 = arith.constant 0 : index
    %31 = vector.load %arg10[%c20, %c0_15] : memref<36x768xf32, #tpu.memory_space<vmem>>, vector<4x768xf32>
    tpu.vector_store %arg10[%c20, %c0_15], %30 {strides = array<i32>} : memref<36x768xf32, #tpu.memory_space<vmem>>, vector<4x768xf32>,
    %32 = vector.extract_strided_slice %10 {offsets = [0, 17], sizes = [4, 751], strides = [1, 1]} : vector<4x768xf32> to vector<4x751xf32>
    %33 = vector.extract_strided_slice %10 {offsets = [0, 0], sizes = [4, 17], strides = [1, 1]} : vector<4x768xf32> to vector<4x17xf32>
    %34 = tpu.concatenate %32, %33 in 1 : vector<4x751xf32>, vector<4x17xf32> -> vector<4x768xf32>
    %c24 = arith.constant 24 : index
    %c0_16 = arith.constant 0 : index
    %35 = vector.load %arg10[%c24, %c0_16] : memref<36x768xf32, #tpu.memory_space<vmem>>, vector<4x768xf32>
    tpu.vector_store %arg10[%c24, %c0_16], %34 {strides = array<i32>} : memref<36x768xf32, #tpu.memory_space<vmem>>, vector<4x768xf32>,
    %36 = vector.extract_strided_slice %10 {offsets = [0, 18], sizes = [4, 750], strides = [1, 1]} : vector<4x768xf32> to vector<4x750xf32>
    %37 = vector.extract_strided_slice %10 {offsets = [0, 0], sizes = [4, 18], strides = [1, 1]} : vector<4x768xf32> to vector<4x18xf32>
    %38 = tpu.concatenate %36, %37 in 1 : vector<4x750xf32>, vector<4x18xf32> -> vector<4x768xf32>
    %c28 = arith.constant 28 : index
    %c0_17 = arith.constant 0 : index
    %39 = vector.load %arg10[%c28, %c0_17] : memref<36x768xf32, #tpu.memory_space<vmem>>, vector<4x768xf32>
    tpu.vector_store %arg10[%c28, %c0_17], %38 {strides = array<i32>} : memref<36x768xf32, #tpu.memory_space<vmem>>, vector<4x768xf32>,
    %40 = vector.extract_strided_slice %10 {offsets = [0, 19], sizes = [4, 749], strides = [1, 1]} : vector<4x768xf32> to vector<4x749xf32>
    %41 = vector.extract_strided_slice %10 {offsets = [0, 0], sizes = [4, 19], strides = [1, 1]} : vector<4x768xf32> to vector<4x19xf32>
    %42 = tpu.concatenate %40, %41 in 1 : vector<4x749xf32>, vector<4x19xf32> -> vector<4x768xf32>
    %c32 = arith.constant 32 : index
    %c0_18 = arith.constant 0 : index
    %43 = vector.load %arg10[%c32, %c0_18] : memref<36x768xf32, #tpu.memory_space<vmem>>, vector<4x768xf32>
    tpu.vector_store %arg10[%c32, %c0_18], %42 {strides = array<i32>} : memref<36x768xf32, #tpu.memory_space<vmem>>, vector<4x768xf32>,
    %c0_19 = arith.constant 0 : index
    %c0_20 = arith.constant 0 : index
    %44 = vector.load %arg5[%c0_19, %c0_20] : memref<8x36xbf16, #tpu.memory_space<vmem>>, vector<8x36xbf16>
    %c0_21 = arith.constant 0 : index
    %c0_22 = arith.constant 0 : index
    %45 = vector.load %arg10[%c0_21, %c0_22] : memref<36x768xf32, #tpu.memory_space<vmem>>, vector<36x768xf32>
    %46 = arith.truncf %45 : vector<36x768xf32> to vector<36x768xbf16>
    %cst = arith.constant dense<0.000000e+00> : vector<8x768xf32>
    %47 = tpu.matmul %44, %46, %cst {dimension_numbers = #tpu.dot_dimension_numbers<[1], [0], [0], [1], [0, 0, 1, 1], [], []>} : vector<8x36xbf16>, vector<36x768xbf16>, vector<8x768xf32> -> vector<8x768xf32>
    %48 = tpu.concatenate %1, %1 in 1 : vector<1x384xf32>, vector<1x384xf32> -> vector<1x768xf32>
    %c0_23 = arith.constant 0 : index
    %c0_24 = arith.constant 0 : index
    %49 = vector.load %arg6[%c0_23, %c0_24] : memref<8x1xf32, #tpu.memory_space<vmem>>, vector<8x1xf32>
    %50 = vector.broadcast %49 : vector<8x1xf32> to vector<8x768xf32>
    %51 = arith.addf %47, %50 : vector<8x768xf32>
    %cst_25 = arith.constant 0.000000e+00 : f32
    %52 = vector.broadcast %cst_25 : f32 to vector<8x768xf32>
    %53 = arith.maximumf %51, %52 : vector<8x768xf32>
    %54 = vector.broadcast %48 : vector<1x768xf32> to vector<8x768xf32>
    %55 = arith.mulf %53, %54 : vector<8x768xf32>
    %56 = vector.extract_strided_slice %55 {offsets = [0, 749], sizes = [8, 19], strides = [1, 1]} : vector<8x768xf32> to vector<8x19xf32>
    %57 = vector.extract_strided_slice %55 {offsets = [0, 0], sizes = [8, 749], strides = [1, 1]} : vector<8x768xf32> to vector<8x749xf32>
    %58 = tpu.concatenate %56, %57 in 1 : vector<8x19xf32>, vector<8x749xf32> -> vector<8x768xf32>
    %c0_26 = arith.constant 0 : index
    %c0_27 = arith.constant 0 : index
    %59 = vector.load %arg11[%c0_26, %c0_27] : memref<72x768xf32, #tpu.memory_space<vmem>>, vector<8x768xf32>
    tpu.vector_store %arg11[%c0_26, %c0_27], %58 {strides = array<i32>} : memref<72x768xf32, #tpu.memory_space<vmem>>, vector<8x768xf32>,
    %60 = vector.extract_strided_slice %55 {offsets = [0, 750], sizes = [8, 18], strides = [1, 1]} : vector<8x768xf32> to vector<8x18xf32>
    %61 = vector.extract_strided_slice %55 {offsets = [0, 0], sizes = [8, 750], strides = [1, 1]} : vector<8x768xf32> to vector<8x750xf32>
    %62 = tpu.concatenate %60, %61 in 1 : vector<8x18xf32>, vector<8x750xf32> -> vector<8x768xf32>
    %c8_28 = arith.constant 8 : index
    %c0_29 = arith.constant 0 : index
    %63 = vector.load %arg11[%c8_28, %c0_29] : memref<72x768xf32, #tpu.memory_space<vmem>>, vector<8x768xf32>
    tpu.vector_store %arg11[%c8_28, %c0_29], %62 {strides = array<i32>} : memref<72x768xf32, #tpu.memory_space<vmem>>, vector<8x768xf32>,
    %64 = vector.extract_strided_slice %55 {offsets = [0, 751], sizes = [8, 17], strides = [1, 1]} : vector<8x768xf32> to vector<8x17xf32>
    %65 = vector.extract_strided_slice %55 {offsets = [0, 0], sizes = [8, 751], strides = [1, 1]} : vector<8x768xf32> to vector<8x751xf32>
    %66 = tpu.concatenate %64, %65 in 1 : vector<8x17xf32>, vector<8x751xf32> -> vector<8x768xf32>
    %c16_30 = arith.constant 16 : index
    %c0_31 = arith.constant 0 : index
    %67 = vector.load %arg11[%c16_30, %c0_31] : memref<72x768xf32, #tpu.memory_space<vmem>>, vector<8x768xf32>
    tpu.vector_store %arg11[%c16_30, %c0_31], %66 {strides = array<i32>} : memref<72x768xf32, #tpu.memory_space<vmem>>, vector<8x768xf32>,
    %68 = vector.extract_strided_slice %55 {offsets = [0, 767], sizes = [8, 1], strides = [1, 1]} : vector<8x768xf32> to vector<8x1xf32>
    %69 = vector.extract_strided_slice %55 {offsets = [0, 0], sizes = [8, 767], strides = [1, 1]} : vector<8x768xf32> to vector<8x767xf32>
    %70 = tpu.concatenate %68, %69 in 1 : vector<8x1xf32>, vector<8x767xf32> -> vector<8x768xf32>
    %c24_32 = arith.constant 24 : index
    %c0_33 = arith.constant 0 : index
    %71 = vector.load %arg11[%c24_32, %c0_33] : memref<72x768xf32, #tpu.memory_space<vmem>>, vector<8x768xf32>
    tpu.vector_store %arg11[%c24_32, %c0_33], %70 {strides = array<i32>} : memref<72x768xf32, #tpu.memory_space<vmem>>, vector<8x768xf32>,
    %c32_34 = arith.constant 32 : index
    %c0_35 = arith.constant 0 : index
    %72 = vector.load %arg11[%c32_34, %c0_35] : memref<72x768xf32, #tpu.memory_space<vmem>>, vector<8x768xf32>
    tpu.vector_store %arg11[%c32_34, %c0_35], %55 {strides = array<i32>} : memref<72x768xf32, #tpu.memory_space<vmem>>, vector<8x768xf32>,
    %73 = vector.extract_strided_slice %55 {offsets = [0, 1], sizes = [8, 767], strides = [1, 1]} : vector<8x768xf32> to vector<8x767xf32>
    %74 = vector.extract_strided_slice %55 {offsets = [0, 0], sizes = [8, 1], strides = [1, 1]} : vector<8x768xf32> to vector<8x1xf32>
    %75 = tpu.concatenate %73, %74 in 1 : vector<8x767xf32>, vector<8x1xf32> -> vector<8x768xf32>
    %c40 = arith.constant 40 : index
    %c0_36 = arith.constant 0 : index
    %76 = vector.load %arg11[%c40, %c0_36] : memref<72x768xf32, #tpu.memory_space<vmem>>, vector<8x768xf32>
    tpu.vector_store %arg11[%c40, %c0_36], %75 {strides = array<i32>} : memref<72x768xf32, #tpu.memory_space<vmem>>, vector<8x768xf32>,
    %77 = vector.extract_strided_slice %55 {offsets = [0, 17], sizes = [8, 751], strides = [1, 1]} : vector<8x768xf32> to vector<8x751xf32>
    %78 = vector.extract_strided_slice %55 {offsets = [0, 0], sizes = [8, 17], strides = [1, 1]} : vector<8x768xf32> to vector<8x17xf32>
    %79 = tpu.concatenate %77, %78 in 1 : vector<8x751xf32>, vector<8x17xf32> -> vector<8x768xf32>
    %c48 = arith.constant 48 : index
    %c0_37 = arith.constant 0 : index
    %80 = vector.load %arg11[%c48, %c0_37] : memref<72x768xf32, #tpu.memory_space<vmem>>, vector<8x768xf32>
    tpu.vector_store %arg11[%c48, %c0_37], %79 {strides = array<i32>} : memref<72x768xf32, #tpu.memory_space<vmem>>, vector<8x768xf32>,
    %81 = vector.extract_strided_slice %55 {offsets = [0, 18], sizes = [8, 750], strides = [1, 1]} : vector<8x768xf32> to vector<8x750xf32>
    %82 = vector.extract_strided_slice %55 {offsets = [0, 0], sizes = [8, 18], strides = [1, 1]} : vector<8x768xf32> to vector<8x18xf32>
    %83 = tpu.concatenate %81, %82 in 1 : vector<8x750xf32>, vector<8x18xf32> -> vector<8x768xf32>
    %c56 = arith.constant 56 : index
    %c0_38 = arith.constant 0 : index
    %84 = vector.load %arg11[%c56, %c0_38] : memref<72x768xf32, #tpu.memory_space<vmem>>, vector<8x768xf32>
    tpu.vector_store %arg11[%c56, %c0_38], %83 {strides = array<i32>} : memref<72x768xf32, #tpu.memory_space<vmem>>, vector<8x768xf32>,
    %85 = vector.extract_strided_slice %55 {offsets = [0, 19], sizes = [8, 749], strides = [1, 1]} : vector<8x768xf32> to vector<8x749xf32>
    %86 = vector.extract_strided_slice %55 {offsets = [0, 0], sizes = [8, 19], strides = [1, 1]} : vector<8x768xf32> to vector<8x19xf32>
    %87 = tpu.concatenate %85, %86 in 1 : vector<8x749xf32>, vector<8x19xf32> -> vector<8x768xf32>
    %c64 = arith.constant 64 : index
    %c0_39 = arith.constant 0 : index
    %88 = vector.load %arg11[%c64, %c0_39] : memref<72x768xf32, #tpu.memory_space<vmem>>, vector<8x768xf32>
    tpu.vector_store %arg11[%c64, %c0_39], %87 {strides = array<i32>} : memref<72x768xf32, #tpu.memory_space<vmem>>, vector<8x768xf32>,
    %c0_40 = arith.constant 0 : index
    %c0_41 = arith.constant 0 : index
    %89 = vector.load %arg7[%c0_40, %c0_41] : memref<16x72xbf16, #tpu.memory_space<vmem>>, vector<16x72xbf16>
    %c0_42 = arith.constant 0 : index
    %c0_43 = arith.constant 0 : index
    %90 = vector.load %arg11[%c0_42, %c0_43] : memref<72x768xf32, #tpu.memory_space<vmem>>, vector<72x768xf32>
    %91 = arith.truncf %90 : vector<72x768xf32> to vector<72x768xbf16>
    %cst_44 = arith.constant dense<0.000000e+00> : vector<16x768xf32>
    %92 = tpu.matmul %89, %91, %cst_44 {dimension_numbers = #tpu.dot_dimension_numbers<[1], [0], [0], [1], [0, 0, 1, 1], [], []>} : vector<16x72xbf16>, vector<72x768xbf16>, vector<16x768xf32> -> vector<16x768xf32>
    %c0_45 = arith.constant 0 : index
    %c0_46 = arith.constant 0 : index
    %93 = vector.load %arg8[%c0_45, %c0_46] : memref<16x1xf32, #tpu.memory_space<vmem>>, vector<16x1xf32>
    %94 = vector.broadcast %93 : vector<16x1xf32> to vector<16x768xf32>
    %95 = arith.addf %92, %94 : vector<16x768xf32>
    %cst_47 = arith.constant 0.000000e+00 : f32
    %96 = vector.broadcast %cst_47 : f32 to vector<16x768xf32>
    %97 = arith.maximumf %95, %96 : vector<16x768xf32>
    %98 = vector.extract_strided_slice %55 {offsets = [0, 0], sizes = [8, 384], strides = [1, 1]} : vector<8x768xf32> to vector<8x384xf32>
    %99 = vector.extract_strided_slice %55 {offsets = [0, 384], sizes = [8, 384], strides = [1, 1]} : vector<8x768xf32> to vector<8x384xf32>
    %100 = arith.subf %98, %99 : vector<8x384xf32>
    %101 = vector.extract_strided_slice %97 {offsets = [0, 0], sizes = [16, 384], strides = [1, 1]} : vector<16x768xf32> to vector<16x384xf32>
    %102 = vector.extract_strided_slice %97 {offsets = [0, 384], sizes = [16, 384], strides = [1, 1]} : vector<16x768xf32> to vector<16x384xf32>
    %103 = arith.subf %101, %102 : vector<16x384xf32>
    %104 = vector.broadcast %1 : vector<1x384xf32> to vector<16x384xf32>
    %105 = arith.mulf %103, %104 : vector<16x384xf32>
    %106 = arith.mulf %100, %100 : vector<8x384xf32>
    %107 = vector.shape_cast %106 : vector<8x384xf32> to vector<1x8x384xf32>
    %cst_48 = arith.constant dense<0.000000e+00> : vector<1xf32>
    %108 = vector.multi_reduction <add>, %107, %cst_48 [1, 2] : vector<1x8x384xf32> to vector<1xf32>
    %109 = vector.shape_cast %108 : vector<1xf32> to vector<1x1x1xf32>
    %110 = vector.extract %109[0, 0, 0] : f32 from vector<1x1x1xf32>
    %111 = arith.mulf %105, %105 : vector<16x384xf32>
    %112 = vector.shape_cast %111 : vector<16x384xf32> to vector<1x16x384xf32>
    %cst_49 = arith.constant dense<0.000000e+00> : vector<1xf32>
    %113 = vector.multi_reduction <add>, %112, %cst_49 [1, 2] : vector<1x16x384xf32> to vector<1xf32>
    %114 = vector.shape_cast %113 : vector<1xf32> to vector<1x1x1xf32>
    %115 = vector.extract %114[0, 0, 0] : f32 from vector<1x1x1xf32>
    %116 = vector.broadcast %110 : f32 to vector<1x128xf32>
    %c0_50 = arith.constant 0 : index
    %c0_51 = arith.constant 0 : index
    %c0_52 = arith.constant 0 : index
    %117 = vector.load %arg9[%c0_50, %c0_51, %c0_52] : memref<1x2x128xf32, #tpu.memory_space<vmem>>, vector<1x1x128xf32>
    %118 = vector.shape_cast %117 : vector<1x1x128xf32> to vector<1x128xf32>
    %119 = vector.shape_cast %116 : vector<1x128xf32> to vector<1x1x128xf32>
    tpu.vector_store %arg9[%c0_50, %c0_51, %c0_52], %119 {strides = array<i32>} : memref<1x2x128xf32, #tpu.memory_space<vmem>>, vector<1x1x128xf32>,
    %120 = vector.broadcast %115 : f32 to vector<1x128xf32>
    %c0_53 = arith.constant 0 : index
    %c1 = arith.constant 1 : index
    %c0_54 = arith.constant 0 : index
    %121 = vector.load %arg9[%c0_53, %c1, %c0_54] : memref<1x2x128xf32, #tpu.memory_space<vmem>>, vector<1x1x128xf32>
    %122 = vector.shape_cast %121 : vector<1x1x128xf32> to vector<1x128xf32>
    %123 = vector.shape_cast %120 : vector<1x128xf32> to vector<1x1x128xf32>
    tpu.vector_store %arg9[%c0_53, %c1, %c0_54], %123 {strides = array<i32>} : memref<1x2x128xf32, #tpu.memory_space<vmem>>, vector<1x1x128xf32>,
    return
  }
  func.func @transform_0(%arg0: i32) -> (i32, i32, i32) {
    %c0_i32 = arith.constant 0 : i32
    %c0_i32_0 = arith.constant 0 : i32
    %c0_i32_1 = arith.constant 0 : i32
    return %arg0, %c0_i32, %c0_i32_0 : i32, i32, i32
  }
  func.func @transform_1(%arg0: i32) -> (i32, i32, i32) {
    %c0_i32 = arith.constant 0 : i32
    %c0_i32_0 = arith.constant 0 : i32
    %c0_i32_1 = arith.constant 0 : i32
    return %arg0, %c0_i32, %c0_i32_0 : i32, i32, i32
  }
  func.func @transform_2(%arg0: i32) -> (i32, i32) {
    %c0_i32 = arith.constant 0 : i32
    %c0_i32_0 = arith.constant 0 : i32
    %c0_i32_1 = arith.constant 0 : i32
    return %c0_i32, %c0_i32_0 : i32, i32
  }
  func.func @transform_3(%arg0: i32) -> (i32, i32) {
    %c0_i32 = arith.constant 0 : i32
    %c0_i32_0 = arith.constant 0 : i32
    %c0_i32_1 = arith.constant 0 : i32
    return %c0_i32, %c0_i32_0 : i32, i32
  }
  func.func @transform_4(%arg0: i32) -> (i32, i32) {
    %c0_i32 = arith.constant 0 : i32
    %c0_i32_0 = arith.constant 0 : i32
    %c0_i32_1 = arith.constant 0 : i32
    return %c0_i32, %c0_i32_0 : i32, i32
  }
  func.func @transform_5(%arg0: i32) -> (i32, i32) {
    %c0_i32 = arith.constant 0 : i32
    %c0_i32_0 = arith.constant 0 : i32
    %c0_i32_1 = arith.constant 0 : i32
    return %c0_i32, %c0_i32_0 : i32, i32
  }
  func.func @transform_6(%arg0: i32) -> (i32, i32) {
    %c0_i32 = arith.constant 0 : i32
    %c0_i32_0 = arith.constant 0 : i32
    %c0_i32_1 = arith.constant 0 : i32
    return %c0_i32, %c0_i32_0 : i32, i32
  }
  func.func @transform_7(%arg0: i32) -> (i32, i32) {
    %c0_i32 = arith.constant 0 : i32
    %c0_i32_0 = arith.constant 0 : i32
    %c0_i32_1 = arith.constant 0 : i32
    return %c0_i32, %c0_i32_0 : i32, i32
  }
  func.func @transform_8(%arg0: i32) -> (i32, i32, i32) {
    %c0_i32 = arith.constant 0 : i32
    %c0_i32_0 = arith.constant 0 : i32
    %c0_i32_1 = arith.constant 0 : i32
    return %arg0, %c0_i32, %c0_i32_0 : i32, i32, i32
  }
}

</mosaic_0001>

<bundles_post_ra>
// kernel: tpu_custom_call.1
= control target key start
LH: loop header
LB: loop body
LE: loop exit
PB: predicated region body
PF: predicated region fallthrough
CT: control target
= control target key end

     0   :  { %s2826_s0 = inlined_call_operand.vmem [shape: f32[2,4,384], index: 0, kind: input, shape index: {}]   ;;  %s2827_s1 = inlined_call_operand.hbm [shape: f32[2,4,384], index: 1, kind: input, shape index: {}]   ;;  %s2828_s2 = inlined_call_operand.hbm [shape: f32[1,384], index: 2, kind: input, shape index: {}]   ;;  %s2829_s3 = inlined_call_operand.hbm [shape: f32[1,384], index: 3, kind: input, shape index: {}]   ;;  %s2830_s4 = inlined_call_operand.vmem [shape: bf16[8,36], index: 4, kind: input, shape index: {}]   ;;  %s2831_s5 = inlined_call_operand.vmem [shape: f32[8,1], index: 5, kind: input, shape index: {}]   ;;  %s2832_s6 = inlined_call_operand.vmem [shape: bf16[16,72], index: 6, kind: input, shape index: {}]   ;;  %s2833_s7 = inlined_call_operand.vmem [shape: f32[16,1], index: 7, kind: input, shape index: {}]   ;;  %s2834_s8 = inlined_call_operand.hbm [shape: f32[2,2,128], index: 8, kind: output, shape index: {}]  }
   0x1   :  { %2838 = sst [smem:[#allocation14_spill]] %s2828_s2 }
   0x2   :  { %2839 = sst [smem:[#allocation15_spill]] %s2829_s3 }
   0x3   :  { %13 = vsyncpa [#allocation5], 0 }
   0x4   :  { %15 = vsyncpa [#allocation5 + $0x1], 0 }
   0x5   :  { %16 = vsyncpa [#allocation8], 0 }
   0x6   :  { %17 = vsyncpa [#allocation6], 0 }
   0x7   :  { %19 = vsyncpa [#allocation6 + $0x1], 0  ;;  %s2063_s27 = smov 0   ;;  %s2065_s28 = smov 0  }
   0x8   :  { %s2067_s29 = smov 0   ;;  %s2069_s30 = smov 0  }
   0x9 LB: > { %s2084_s9 = sadd.s32 4294967295, %s2003_s30   ;;  %s1632_s10 = sadd.s32 4294967294, %s2003_s30   ;;  %s2003_s30 = sphi %s2069_s30, %s2858_s30   ;;  %s1999_s29 = sphi %s2067_s29, %s2857_s29   ;;  %s1995_s28 = sphi %s2065_s28, %s2856_s28   ;;  %s1991_s27 = sphi %s2063_s27, %s2855_s27  }
   0xa   : > { %p71_p0 = scmp.ne.s32.totalorder %s1995_s28, %s1991_s27  ;;  %p2835_p1 = scmp.eq.s32.totalorder %s2084_s9, 0 }
   0xb   : > { %p227_p3 = scmp.eq.s32.totalorder %s1632_s10, 1  ;;  %p1633_p5 = scmp.ge.s32.totalorder %s2003_s30, 1 }
   0xc   : > { %p2093_p4 = por %p2835_p1, %p71_p0  ;;  %p234_p7 = scmp.lt.s32.totalorder %s2003_s30, 3 }
   0xd   : > { %p2098_p6 = por %p227_p3, %p71_p0  ;;  %s2005_s14 = smov [#allocation7]  }
   0xe   : > { %s2840_s11 = scalar_select %p2093_p4, 1, 0 }
   0xf   : > { %s2841_s12 = scalar_select %p2098_p6, 1, 0 }
  0x10   : > { %p2103_p8 = pnand %p1633_p5, %p234_p7  ;;  %s247_s15 = sshll.u32 %s2005_s14, 4  ;;  %s248_s15 = int_to_ptr.vmem [resolvable:$true] %s247_s15 }
  0x11   : > { %s2006_s16 = smov [#allocation9]   ;;  %s2119_s19 = sadd.s32 1, %s2003_s30  }
  0x12   : > { %s2842_s13 = scalar_select %p2103_p8, 1, 0 }
  0x13   : > { %p1680_p10 = pneg %p2103_p8  ;;  %s258_s17 = sshll.u32 %s2006_s16, 4  ;;  %s2116_s17 = int_to_ptr.vmem [resolvable:$true] %s258_s17 }
  0x14   : > { %s55_s20 = ssub.s32 %s2003_s30, %s2119_s19  ;;  %s2844_s2 = sld [smem:[#allocation14_spill]] }
  0x15   : > { %p2112_p11 = pnand %p1680_p10, %p2835_p1 }
  0x17   : > { %p1849_p13 = pneg %p2112_p11 }
  0x1a   : > { %s1847_s23 = scalar_lea.hbm %s2844_s2, 48 }
  0x1b   : > { %p1848_p12 = scmp.ne.s32.totalorder %s2844_s2, %s1847_s23  ;;  %p1854_p5 = scmp.lt.u32.totalorder %s1847_s23, %s2844_s2 }
  0x1d   : > { %p1850_p0 = pnand %p1849_p13, %p1848_p12 }
  0x1f   : > { %p1851_p3 = pneg %p1850_p0 }
  0x21   : > { %p1856_p7 = pnand %p1854_p5, %p1851_p3 }
  0x23   : > { %1859 = shalt.err (!%p1856_p7)
}
  0x24   : > { %s1860_s14 = scalar_lea.vmem %s248_s15, 48  ;;  %s1867_s16 = scalar_lea.vmem %s248_s15, 64 }
  0x25   : > { %p1861_p10 = scmp.ne.s32.totalorder %s248_s15, %s1860_s14  ;;  %p1868_p2 = scmp.lt.s32.totalorder %s248_s15, %s248_s15 }
  0x26   : > { %p1869_p6 = scmp.lt.s32.totalorder %s1867_s16, %s1860_s14 }
  0x27   : > { %p1863_p9 = pnand %p1861_p10, %p1849_p13 }
  0x28   : > { %p1870_p4 = por %p1869_p6, %p1868_p2 }
  0x29   : > { %p1864_p1 = pneg %p1863_p9 }
  0x2b   : > { %p1871_p8 = pnand %p1870_p4, %p1864_p1 }
  0x2d   : > { %1874 = shalt.err (!%p1871_p8)
}
  0x2e   : > { %1683 = dma.hbm_to_vmem [thread:$0]  (!%p2112_p11), %s2844_s2, 48, %s248_s15, [#allocation8]  }
  0x2f   : > { %s2845_s3 = sld [smem:[#allocation15_spill]] }
  0x35   : > { %s1875_s25 = scalar_lea.hbm %s2845_s3, 48 }
  0x36   : > { %p1876_p9 = scmp.ne.s32.totalorder %s2845_s3, %s1875_s25  ;;  %p1882_p4 = scmp.lt.u32.totalorder %s1875_s25, %s2845_s3 }
  0x38   : > { %p1878_p2 = pnand %p1876_p9, %p1849_p13 }
  0x3a   : > { %p1879_p1 = pneg %p1878_p2 }
  0x3c   : > { %p1884_p6 = pnand %p1882_p4, %p1879_p1 }
  0x3e   : > { %1887 = shalt.err (!%p1884_p6)
}
  0x3f   : > { %s1888_s15 = scalar_lea.vmem %s2116_s17, 48  ;;  %s1895_s21 = scalar_lea.vmem %s2116_s17, 64 }
  0x40   : > { %p1889_p8 = scmp.ne.s32.totalorder %s2116_s17, %s1888_s15  ;;  %p1896_p3 = scmp.lt.s32.totalorder %s2116_s17, %s2116_s17 }
  0x41   : > { %p1897_p5 = scmp.lt.s32.totalorder %s1895_s21, %s1888_s15 }
  0x42   : > { %p1891_p12 = pnand %p1889_p8, %p1849_p13 }
  0x43   : > { %p1898_p7 = por %p1897_p5, %p1896_p3 }
  0x44   : > { %p1892_p0 = pneg %p1891_p12 }
  0x46   : > { %p1899_p10 = pnand %p1898_p7, %p1892_p0 }
  0x48   : > { %1902 = shalt.err (!%p1899_p10)
}
  0x49   : > { %1686 = dma.hbm_to_vmem [thread:$0]  (!%p2112_p11), %s2845_s3, 48, %s2116_s17, [#allocation8]  }
  0x4a   : > { %p56_p13 = scmp.eq.s32.totalorder %s55_s20, 0  ;;  %s58_s24 = sadd.s32 1, %s1999_s29 }
  0x4b   : > { %p65_p9 = scmp.ne.s32.totalorder %s1999_s29, %s1995_s28  ;;  %p66_p2 = scmp.eq.s32.totalorder %s2003_s30, 0 }
  0x4c   : > { %s2179_s18 = scalar_select %p56_p13, %s1999_s29, %s58_s24  }
  0x4d   : > { %p67_p1 = por %p66_p2, %p65_p9  ;;  %p2846_p4 = scmp.eq.s32.totalorder %s2084_s9, 1 }
  0x4e   : > { %p1697_p8 = scmp.lt.s32.totalorder %s2003_s30, 2  ;;  %s289_s26 = sand.u32 1, %s1999_s29  }
  0x4f   : > { %p2183_p6 = por %p2846_p4, %p65_p9  ;;  %s1660_s10 = smul.u32 12, %s289_s26 }
  0x50   : > { %s1661_s14 = smul.u32 192, %s2003_s30  ;;  %p2190_p12 = pnand %p1697_p8, %p67_p1 }
  0x51   : > { %s293_s21 = scalar_lea.vmem [#allocation4], %s1660_s10  ;;  %s290_s23 = scalar_lea.sflag [#allocation5], %s289_s26 }
  0x52   : > { %s2197_s15 = scalar_lea.hbm %s2827_s1, %s1661_s14  ;;  %s301_s22 = sshll.u32 %s293_s21, 4  ;;  %s2199_s22 = int_to_ptr.vmem [resolvable:$true] %s301_s22 }
  0x53   : > { %s1903_s24 = scalar_lea.hbm %s2197_s15, 192  ;;  %p1905_p0 = pneg %p2190_p12 }
  0x54   : > { %p1904_p11 = scmp.ne.s32.totalorder %s2197_s15, %s1903_s24  ;;  %s1908_s20 = scalar_lea.hbm %s2827_s1, 384 }
  0x55   : > { %p1909_p7 = scmp.lt.u32.totalorder %s2197_s15, %s2827_s1  ;;  %p1910_p10 = scmp.lt.u32.totalorder %s1908_s20, %s1903_s24 }
  0x56   : > { %p1906_p3 = pnand %p1905_p0, %p1904_p11  ;;  %p1912_p9 = scmp.lt.u32.totalorder %s1903_s24, %s2197_s15 }
  0x57   : > { %p1911_p13 = por %p1910_p10, %p1909_p7 }
  0x58   : > { %p1907_p5 = pneg %p1906_p3 }
  0x59   : > { %p1913_p2 = por %p1912_p9, %p1911_p13 }
  0x5b   : > { %p1914_p1 = pnand %p1913_p2, %p1907_p5 }
  0x5d   : > { %1917 = shalt.err (!%p1914_p1)
}
  0x5e   : > { %s1918_s26 = scalar_lea.vmem %s2199_s22, 192  ;;  %s2007_s10 = smov [#allocation4]  }
  0x5f   : > { %p1919_p4 = scmp.ne.s32.totalorder %s2199_s22, %s1918_s26  ;;  %s1923_s21 = sshll.u32 %s2007_s10, 4  ;;  %s1924_s21 = int_to_ptr.vmem [resolvable:$false] %s1923_s21 }
  0x60   : > { %s1925_s2 = scalar_lea.vmem %s1924_s21, 384  ;;  %p1926_p3 = scmp.lt.s32.totalorder %s2199_s22, %s1924_s21 }
  0x61   : > { %p1921_p8 = pnand %p1919_p4, %p1905_p0  ;;  %p1927_p7 = scmp.lt.s32.totalorder %s1925_s2, %s1918_s26 }
  0x63   : > { %p1922_p11 = pneg %p1921_p8  ;;  %p1928_p10 = por %p1927_p7, %p1926_p3 }
  0x65   : > { %p1929_p13 = pnand %p1928_p10, %p1922_p11 }
  0x67   : > { %1932 = shalt.err (!%p1929_p13)
}
  0x68   : > { %1690 = dma.hbm_to_vmem [thread:$0]  (!%p2190_p12), %s2197_s15, 192, %s2199_s22, %s290_s23  }
  0x69   : > { %p2849_p5 = scmp.ne.s32.totalorder %s2842_s13, 0 }
  0x6a   : > { %s2229_s3 = sand.u32 (!%p2849_p5), 1, %s1995_s28   ;;  %p2850_p0 = scmp.ne.s32.totalorder (!%p2849_p5), %s2840_s11, 0 }
  0x6b   : > { %310 = sbr.rel (%p2849_p5) target bundleno = 1195 (0x4ab), region = 52  ;;  %s313_s17 = scalar_lea.sflag (!%p2849_p5), [#allocation5], %s2229_s3 }
  0x6c   : > { %s1662_s24 = smul.u32 (!%p2849_p5), 12, %s2229_s3 }
  0x6e   : > { %s316_s14 = scalar_lea.vmem (!%p2849_p5), [#allocation4], %s1662_s24 }
  0x72   : > { %1978 = dma.done.wait (%p2850_p0), %s313_s17, 192  }
  0x73   : > { %1980 = vsyncadd (%p2850_p0), %s313_s17, 4294967104  ;;  %p2851_p9 = scmp.eq.s32.totalorder %s2084_s9, 0 }
  0x75   : > { %1982 = dma.done.wait (%p2851_p9), [#allocation8], 96   ;;  %p2852_p12 = pmov %p2851_p9 }
  0x76   : > { %v373_v0 = vlaneseq  ;;  %p362_p2 = scmp.lt.s32.totalorder %s2084_s9, 1  ;;  %v368_v5 = vld [vmem:[#allocation7] sm:$0x7]  ;;  %v391_v6 = vld [vmem:[%s316_s14 + $0x8] sm:$0xf]  ;;  %v390_v11 = vld [vmem:[%s316_s14] sm:$0xff] }
  0x77   : > { %1984 = vsyncadd (%p2852_p12), [#allocation8], 4294967200  ;;  %s2008_s23 = smov 1   ;;  %s2009_s20 = smov 18   ;;  %v2016_v20 = vmov 0   ;;  %v761_v21 = vld [vmem:[%s2831_s5] sm:$0xff] }
  0x78   : > { %v2242_v1 = vshrl.u32 %v373_v0, 7  ;;  %s363_s13 = scalar_select %p362_p2, %s2084_s9, 1  ;;  %822 = vmatprep.mubr.bf16.mxu0 %v2016_v20  ;;  %863 = vmatprep.mubr.bf16.mxu1 %v2016_v20  ;;  %vm519_vm0 = vcmask 7168   ;;  %vm447_vm1 = vcmask 146432   ;;  %vm415_vm2 = vcmask 154624  }
  0x79   : > { %s2010_s26 = smov 19   ;;  %s2011_s10 = smov 17   ;;  %1744 = vset.pattern.permute.xlu0 %v2016_v20  ;;  %1845 = vset.pattern.permute.xlu1 %v2016_v20  ;;  %vm487_vm3 = vcmask 138240   ;;  %vm564_vm4 = vcmask 1039360   ;;  %vm636_vm5 = vcmask 900096   ;;  %vm604_vm6 = vcmask 908288  }
  0x7a   : > { %v2246_v2 = vsub.s32 0, %v2242_v1  ;;  %v379_v3 = vsub.s32 1, %v2242_v1  ;;  %v383_v4 = vsub.s32 2, %v2242_v1  ;;  %s1663_s11 = smul.u32 12, %s363_s13  ;;  %s2012_s21 = smov 127   ;;  %vm676_vm7 = vcmask 891904  }
  0x7b   : > { %s2013_s2 = smov 110   ;;  %s2014_s24 = smov 111   ;;  %vm771_vm8 = vcmask 1041408   ;;  %vm767_vm9 = vcmask 293888   ;;  %vm1304_vm10 = vcmask 1043456   ;;  %vm1300_vm11 = vcmask 588800  }
  0x7c   : > { %s366_s22 = scalar_lea.vmem %s2826_s0, %s1663_s11  ;;  %v384_v7 = vrot.slane %v368_v5, %v383_v4  ;;  %v376_v8 = vrot.slane %v368_v5, %v2246_v2  ;;  %v380_v9 = vrot.slane %v368_v5, %v379_v3  ;;  %s2015_s17 = smov 109  }
  0x7d   : > { %v371_v10 = vld [vmem:[%s366_s22 + $0x8] sm:$0xf]  ;;  %v370_v12 = vld [vmem:[%s366_s22] sm:$0xff]  ;;  %s1657_s14 = sshll.u32 %s2084_s9, 5  ;;  %s1518_s22 = scalar_lea.sflag [#allocation6], %s2229_s3 }
  0x7e   : > { %v2258_v13 = vmul.f32 %v391_v6, %v384_v7  ;;  %v386_v14 = vcombine.low %v376_v8, %v380_v9  ;;  %v2260_v15 = vmul.f32 %v384_v7, %v371_v10  ;;  %s2783_s15 = scalar_lea.hbm %s2834_s8, %s1657_s14  ;;  %s2017_s9 = smov [#allocation10]  }
  0x80   : > { %506 = vrot.lane.b32.xlu1 %v2258_v13, %s2008_s23  ;;  %v2264_v16 = vmul.f32 %v390_v11, %v386_v14  ;;  %551 = vst [vmem:[#allocation2 + $0x88] sm:$0xf] %v2258_v13  ;;  %434 = vrot.lane.b32.xlu0 %v2258_v13, %s2009_s20  ;;  %v388_v17 = vmul.f32 %v386_v14, %v370_v12  ;;  %548 = vst [vmem:[#allocation2 + $0x70] sm:$0xf] %v2260_v15 }
  0x82   : > { %549 = vst [vmem:[#allocation2 + $0x78] sm:$0xf] %v2264_v16  ;;  %546 = vst [vmem:[#allocation2 + $0x60] sm:$0xf] %v388_v17  ;;  %v396_v18 = vcombine.high %v388_v17, %v388_v17  ;;  %v400_v19 = vcombine.high %v2264_v16, %v2264_v16 }
  0x84   : > { %509 = vrot.lane.b32.xlu1 %v388_v17, %s2008_s23  ;;  %437 = vrot.lane.b32.xlu0 %v388_v17, %s2009_s20  ;;  %547 = vst [vmem:[#allocation2 + $0x68] sm:$0xf] %v396_v18  ;;  %550 = vst [vmem:[#allocation2 + $0x80] sm:$0xf] %v400_v19 }
  0x88   : > { %405 = vrot.lane.b32.xlu0 %v388_v17, %s2010_s26  ;;  %511 = vrot.lane.b32.xlu1 %v396_v18, %s2008_s23 }
  0x8c   : > { %477 = vrot.lane.b32.xlu0 %v388_v17, %s2011_s10  ;;  %407 = vrot.lane.b32.xlu1 %v396_v18, %s2010_s26 }
  0x90   : > { %479 = vrot.lane.b32.xlu1 %v396_v18, %s2011_s10  ;;  %439 = vrot.lane.b32.xlu0 %v396_v18, %s2009_s20 }
  0x94   : > { %474 = vrot.lane.b32.xlu1 %v2258_v13, %s2011_s10  ;;  %402 = vrot.lane.b32.xlu0 %v2258_v13, %s2010_s26 }
  0x98   : > { %556 = vrot.lane.b32.xlu1 %v2260_v15, %s2012_s21  ;;  %554 = vrot.lane.b32.xlu0 %v396_v18, %s2012_s21 }
  0x9c   : > { %628 = vrot.lane.b32.xlu1 %v2260_v15, %s2013_s2  ;;  %626 = vrot.lane.b32.xlu0 %v396_v18, %s2013_s2 }
  0xa0   : > { %624 = vrot.lane.b32.xlu1 %v388_v17, %s2013_s2  ;;  %552 = vrot.lane.b32.xlu0 %v388_v17, %s2012_s21 }
  0xa4   : > { %596 = vrot.lane.b32.xlu1 %v2260_v15, %s2014_s24  ;;  %594 = vrot.lane.b32.xlu0 %v396_v18, %s2014_s24 }
  0xa8   : > { %664 = vrot.lane.b32.xlu1 %v388_v17, %s2015_s17  ;;  %592 = vrot.lane.b32.xlu0 %v388_v17, %s2014_s24 }
  0xac   : > { %668 = vrot.lane.b32.xlu1 %v2260_v15, %s2015_s17  ;;  %666 = vrot.lane.b32.xlu0 %v396_v18, %s2015_s17 }
  0xb0   : > { %517 = vrot.lane.b32.xlu1 %v400_v19, %s2008_s23  ;;  %445 = vrot.lane.b32.xlu0 %v400_v19, %s2009_s20 }
  0xb4   : > { %515 = vrot.lane.b32.xlu1 %v2264_v16, %s2008_s23  ;;  %443 = vrot.lane.b32.xlu0 %v2264_v16, %s2009_s20 }
  0xb8   : > { %485 = vrot.lane.b32.xlu1 %v400_v19, %s2011_s10  ;;  %413 = vrot.lane.b32.xlu0 %v400_v19, %s2010_s26 }
  0xbc   : > { %483 = vrot.lane.b32.xlu1 %v2264_v16, %s2011_s10  ;;  %411 = vrot.lane.b32.xlu0 %v2264_v16, %s2010_s26 }
  0xc0   : > { %634 = vrot.lane.b32.xlu1 %v2258_v13, %s2013_s2  ;;  %562 = vrot.lane.b32.xlu0 %v2258_v13, %s2012_s21 }
  0xc4   : > { %632 = vrot.lane.b32.xlu1 %v400_v19, %s2013_s2  ;;  %560 = vrot.lane.b32.xlu0 %v400_v19, %s2012_s21 }
  0xc8   : > { %600 = vrot.lane.b32.xlu1 %v400_v19, %s2014_s24  ;;  %602 = vrot.lane.b32.xlu0 %v2258_v13, %s2014_s24 }
  0xcc   : > { %513 = vrot.lane.b32.xlu1 %v2260_v15, %s2008_s23  ;;  %441 = vrot.lane.b32.xlu0 %v2260_v15, %s2009_s20 }
  0xd0   : > { %481 = vrot.lane.b32.xlu1 %v2260_v15, %s2011_s10  ;;  %409 = vrot.lane.b32.xlu0 %v2260_v15, %s2010_s26 }
  0xd4   : > { %674 = vrot.lane.b32.xlu1 %v2258_v13, %s2015_s17  ;;  %672 = vrot.lane.b32.xlu0 %v400_v19, %s2015_s17 }
  0xd8   : > { %630 = vrot.lane.b32.xlu1 %v2264_v16, %s2013_s2  ;;  %558 = vrot.lane.b32.xlu0 %v2264_v16, %s2012_s21 }
  0xdc   : > { %670 = vrot.lane.b32.xlu1 %v2264_v16, %s2015_s17  ;;  %598 = vrot.lane.b32.xlu0 %v2264_v16, %s2014_s24 }
  0xe0   : > { %764 = vperm.xlu0 %1744, %v761_v21  }
  0xf2   : > { %v2348_v22 = vpop.permute.xlu1 %506  ;;  %v2350_v23 = vpop.permute.xlu0 %434 }
  0xf6   : > { %v510_v24 = vpop.permute.xlu1 %509  ;;  %v438_v25 = vpop.permute.xlu0 %437 }
  0xf7   : > { %v526_v26 = vsel %vm519_vm0, %v2348_v22, %v510_v24  ;;  %v454_v27 = vsel %vm447_vm1, %v2350_v23, %v438_v25 }
  0xf8   : > { %v528_v28 = vrot.slane %v526_v26, 4  ;;  %v456_v29 = vrot.slane %v454_v27, 4 }
  0xfa   : > { %540 = vst [vmem:[#allocation2 + $0x30] sm:$0xf0] %v528_v28  ;;  %468 = vst [vmem:[#allocation2] sm:$0xf0] %v456_v29  ;;  %v406_v30 = vpop.permute.xlu0 %405  ;;  %v2356_v31 = vpop.permute.xlu1 %511 }
  0xfb   : > { %v520_v32 = vsel %vm519_vm0, %v510_v24, %v2356_v31 }
  0xfc   : > { %v529_v33 = vrot.slane %v520_v32, 4 }
  0xfe   : > { %541 = vst [vmem:[#allocation2 + $0x38] sm:$0xf0] %v529_v33  ;;  %v478_v34 = vpop.permute.xlu0 %477  ;;  %v2360_v35 = vpop.permute.xlu1 %407 }
  0xff   : > { %v416_v36 = vsel %vm415_vm2, %v406_v30, %v2360_v35 }
 0x100   : > { %429 = vst [vmem:[#allocation2 + $0x8] sm:$0xf] %v416_v36 }
 0x102   : > { %v2364_v37 = vpop.permute.xlu1 %479  ;;  %v2366_v38 = vpop.permute.xlu0 %439 }
 0x103   : > { %v488_v39 = vsel %vm487_vm3, %v478_v34, %v2364_v37  ;;  %v448_v40 = vsel %vm447_vm1, %v438_v25, %v2366_v38 }
 0x104   : > { %501 = vst [vmem:[#allocation2 + $0x38] sm:$0xf] %v488_v39  ;;  %v457_v41 = vrot.slane %v448_v40, 4 }
 0x106   : > { %469 = vst [vmem:[#allocation2 + $0x8] sm:$0xf0] %v457_v41  ;;  %v2372_v42 = vpop.permute.xlu1 %474  ;;  %v2374_v43 = vpop.permute.xlu0 %402 }
 0x107   : > { %v499_v44 = vsel %vm487_vm3, %v2372_v42, %v478_v34  ;;  %v427_v45 = vsel %vm415_vm2, %v2374_v43, %v406_v30 }
 0x108   : > { %500 = vst [vmem:[#allocation2 + $0x30] sm:$0xf] %v499_v44  ;;  %428 = vst [vmem:[#allocation2] sm:$0xf] %v427_v45 }
 0x10a   : > { %v2380_v46 = vpop.permute.xlu1 %556  ;;  %v555_v47 = vpop.permute.xlu0 %554 }
 0x10b   : > { %v566_v48 = vsel %vm564_vm4, %v555_v47, %v2380_v46  ;;  %v704_v51 = vld [vmem:[#allocation2 + $0x38] sm:$0xff] }
 0x10c   : > { %v575_v49 = vrot.slane %v566_v48, 4 }
 0x10d   : > { %v698_v50 = vld [vmem:[#allocation2 + $0x8] sm:$0xff] }
 0x10e   : > { %587 = vst [vmem:[#allocation2 + $0x68] sm:$0xf0] %v575_v49  ;;  %v2384_v52 = vpop.permute.xlu1 %628  ;;  %v627_v53 = vpop.permute.xlu0 %626  ;;  %v728_v54 = vpack.c.bf16 %v704_v51, %v698_v50  ;;  %v2433_v51 = vld [vmem:[%s2830_s4] sm:$0xf] }
 0x10f   : > { %v638_v55 = vsel %vm636_vm5, %v627_v53, %v2384_v52  ;;  %v697_v56 = vld [vmem:[#allocation2] sm:$0xff]  ;;  %v703_v57 = vld [vmem:[#allocation2 + $0x30] sm:$0xff] }
 0x110   : > { %v647_v58 = vrot.slane %v638_v55, 4  ;;  %790 = vmatprep.subr.bf16.mxu0 %v728_v54  ;;  %v727_v59 = vpack.c.bf16 %v703_v57, %v697_v56 }
 0x112   : > { %659 = vst [vmem:[#allocation2 + $0x98] sm:$0xf0] %v647_v58  ;;  %v2388_v60 = vpop.permute.xlu1 %624  ;;  %791 = vmatpush1.bf16.msra.mxu0 %v727_v59  ;;  %v2390_v61 = vpop.permute.xlu0 %552 }
 0x113   : > { %v637_v62 = vsel %vm636_vm5, %v2388_v60, %v627_v53  ;;  %v565_v63 = vsel %vm564_vm4, %v2390_v61, %v555_v47 }
 0x114   : > { %v646_v0 = vrot.slane %v637_v62, 4  ;;  %v574_v5 = vrot.slane %v565_v63, 4 }
 0x115   : > { %v710_v16 = vld [vmem:[#allocation2 + $0x68] sm:$0xff] }
 0x116   : > { %658 = vst [vmem:[#allocation2 + $0x90] sm:$0xf0] %v646_v0  ;;  %586 = vst [vmem:[#allocation2 + $0x60] sm:$0xf0] %v574_v5  ;;  %v2396_v6 = vpop.permute.xlu1 %596  ;;  %v595_v7 = vpop.permute.xlu0 %594 }
 0x117   : > { %v606_v8 = vsel %vm604_vm6, %v595_v7, %v2396_v6 }
 0x118   : > { %619 = vst [vmem:[#allocation2 + $0x98] sm:$0xf] %v606_v8 }
 0x11a   : > { %v2400_v9 = vpop.permute.xlu1 %664  ;;  %v2402_v10 = vpop.permute.xlu0 %592 }
 0x11b   : > { %v605_v11 = vsel %vm604_vm6, %v2402_v10, %v595_v7 }
 0x11c   : > { %618 = vst [vmem:[#allocation2 + $0x90] sm:$0xf] %v605_v11 }
 0x11d   : > { %v709_v26 = vld [vmem:[#allocation2 + $0x60] sm:$0xff] }
 0x11e   : > { %v2406_v12 = vpop.permute.xlu1 %668  ;;  %v667_v13 = vpop.permute.xlu0 %666 }
 0x11f   : > { %v677_v14 = vsel %vm676_vm7, %v2400_v9, %v667_v13  ;;  %v678_v15 = vsel %vm676_vm7, %v667_v13, %v2406_v12  ;;  %v716_v17 = vld [vmem:[#allocation2 + $0x98] sm:$0xff] }
 0x120   : > { %690 = vst [vmem:[#allocation2 + $0xc0] sm:$0xf] %v677_v14  ;;  %691 = vst [vmem:[#allocation2 + $0xc8] sm:$0xf] %v678_v15  ;;  %v734_v18 = vpack.c.bf16 %v716_v17, %v710_v16 }
 0x122   : > { %v518_v19 = vpop.permute.xlu1 %517  ;;  %v446_v21 = vpop.permute.xlu0 %445  ;;  %792 = vmatprep.subr.bf16.mxu0 %v734_v18 }
 0x123   : > { %v524_v24 = vsel %vm519_vm0, %v518_v19, %v2348_v22  ;;  %v452_v25 = vsel %vm447_vm1, %v446_v21, %v2350_v23  ;;  %v715_v27 = vld [vmem:[#allocation2 + $0x90] sm:$0xff] }
 0x124   : > { %v533_v28 = vrot.slane %v524_v24, 4  ;;  %v461_v29 = vrot.slane %v452_v25, 4  ;;  %v733_v30 = vpack.c.bf16 %v715_v27, %v709_v26 }
 0x126   : > { %545 = vst [vmem:[#allocation2 + $0x58] sm:$0xf0] %v533_v28  ;;  %473 = vst [vmem:[#allocation2 + $0x28] sm:$0xf0] %v461_v29  ;;  %v2416_v32 = vpop.permute.xlu1 %515  ;;  %v2418_v33 = vpop.permute.xlu0 %443  ;;  %793 = vmatpush1.bf16.msra.mxu0 %v733_v30 }
 0x127   : > { %v523_v34 = vsel %vm519_vm0, %v2416_v32, %v518_v19  ;;  %v451_v22 = vsel %vm447_vm1, %v2418_v33, %v446_v21  ;;  %v722_v36 = vld [vmem:[#allocation2 + $0xc8] sm:$0xf]  ;;  %v721_v23 = vld [vmem:[#allocation2 + $0xc0] sm:$0xf] }
 0x128   : > { %v532_v39 = vrot.slane %v523_v34, 4  ;;  %v460_v40 = vrot.slane %v451_v22, 4  ;;  %v740_v41 = vpack.c.bf16 %v722_v36, %v722_v36  ;;  %v739_v44 = vpack.c.bf16 %v721_v23, %v721_v23 }
 0x12a   : > { %544 = vst [vmem:[#allocation2 + $0x50] sm:$0xf0] %v532_v39  ;;  %472 = vst [vmem:[#allocation2 + $0x20] sm:$0xf0] %v460_v40  ;;  %v486_v45 = vpop.permute.xlu1 %485  ;;  %v414_v47 = vpop.permute.xlu0 %413  ;;  %1643 = vmatprep.subr.msk.bf16.mxu0 %vm771_vm8, %v740_v41  ;;  %v773_v48 = vsel %vm771_vm8, %v739_v44, 0 }
 0x12b   : > { %v492_v49 = vsel %vm487_vm3, %v486_v45, %v2372_v42  ;;  %v420_v50 = vsel %vm415_vm2, %v414_v47, %v2374_v43  ;;  %795 = vmatpush1.bf16.msra.mxu0 %v773_v48 }
 0x12c   : > { %505 = vst [vmem:[#allocation2 + $0x58] sm:$0xf] %v492_v49  ;;  %433 = vst [vmem:[#allocation2 + $0x28] sm:$0xf] %v420_v50 }
 0x12e   : > { %v484_v53 = vpop.permute.xlu1 %483  ;;  %v412_v54 = vpop.permute.xlu0 %411  ;;  %1644 = vmatmul.mubr.msk.bf16.vlgmr.msra.gmra.mrb[0].mxu0 %vm767_vm9, %v2433_v51 }
 0x12f   : > { %v491_v55 = vsel %vm487_vm3, %v484_v53, %v486_v45  ;;  %v419_v42 = vsel %vm415_vm2, %v412_v54, %v414_v47  ;;  %904 = vmatprep.mubr.bf16.mxu0 %v2016_v20 }
 0x130   : > { %504 = vst [vmem:[#allocation2 + $0x50] sm:$0xf] %v491_v55  ;;  %432 = vst [vmem:[#allocation2 + $0x20] sm:$0xf] %v419_v42 }
 0x132   : > { %v635_v43 = vpop.permute.xlu1 %634  ;;  %v563_v56 = vpop.permute.xlu0 %562 }
 0x133   : > { %v644_v57 = vsel %vm636_vm5, %v635_v43, %v2388_v60  ;;  %v572_v58 = vsel %vm564_vm4, %v563_v56, %v2390_v61  ;;  %v702_v59 = vld [vmem:[#allocation2 + $0x28] sm:$0xff]  ;;  %v708_v62 = vld [vmem:[#allocation2 + $0x58] sm:$0xff] }
 0x134   : > { %v651_v63 = vrot.slane %v644_v57, 4  ;;  %v579_v0 = vrot.slane %v572_v58, 4  ;;  %v732_v5 = vpack.c.bf16 %v708_v62, %v702_v59 }
 0x136   : > { %663 = vst [vmem:[#allocation2 + $0xb8] sm:$0xf0] %v651_v63  ;;  %591 = vst [vmem:[#allocation2 + $0x88] sm:$0xf0] %v579_v0  ;;  %v633_v7 = vpop.permute.xlu1 %632  ;;  %v561_v8 = vpop.permute.xlu0 %560  ;;  %872 = vmatprep.subr.bf16.mxu0 %v732_v5 }
 0x137   : > { %v641_v11 = vsel %vm636_vm5, %v633_v7, %v635_v43  ;;  %v569_v13 = vsel %vm564_vm4, %v561_v8, %v563_v56  ;;  %v701_v14 = vld [vmem:[#allocation2 + $0x20] sm:$0xff]  ;;  %v707_v15 = vld [vmem:[#allocation2 + $0x50] sm:$0xff] }
 0x138   : > { %v650_v60 = vrot.slane %v641_v11, 4  ;;  %v578_v16 = vrot.slane %v569_v13, 4  ;;  %v731_v17 = vpack.c.bf16 %v707_v15, %v701_v14 }
 0x13a   : > { %662 = vst [vmem:[#allocation2 + $0xb0] sm:$0xf0] %v650_v60  ;;  %590 = vst [vmem:[#allocation2 + $0x80] sm:$0xf0] %v578_v16  ;;  %v2446_v61 = vpop.permute.xlu1 %600  ;;  %v603_v18 = vpop.permute.xlu0 %602  ;;  %873 = vmatpush1.bf16.msra.mxu0 %v731_v17 }
 0x13b   : > { %v609_v19 = vsel %vm604_vm6, %v2446_v61, %v603_v18  ;;  %v617_v21 = vsel %vm604_vm6, %v603_v18, %v2402_v10 }
 0x13c   : > { %622 = vst [vmem:[#allocation2 + $0xb0] sm:$0xf] %v609_v19  ;;  %623 = vst [vmem:[#allocation2 + $0xb8] sm:$0xf] %v617_v21 }
 0x13e   : > { %v514_v24 = vpop.permute.xlu1 %513  ;;  %v442_v25 = vpop.permute.xlu0 %441 }
 0x13f   : > { %v521_v26 = vsel %vm519_vm0, %v2356_v31, %v514_v24  ;;  %v522_v27 = vsel %vm519_vm0, %v514_v24, %v2416_v32  ;;  %v449_v28 = vsel %vm447_vm1, %v2366_v38, %v442_v25  ;;  %v450_v29 = vsel %vm447_vm1, %v442_v25, %v2418_v33  ;;  %v714_v31 = vld [vmem:[#allocation2 + $0x88] sm:$0xff] }
 0x140   : > { %v530_v30 = vrot.slane %v521_v26, 4  ;;  %v531_v34 = vrot.slane %v522_v27, 4  ;;  %v458_v22 = vrot.slane %v449_v28, 4  ;;  %v459_v10 = vrot.slane %v450_v29, 4 }
 0x141   : > { %v713_v41 = vld [vmem:[#allocation2 + $0x80] sm:$0xff] }
 0x142   : > { %542 = vst [vmem:[#allocation2 + $0x40] sm:$0xf0] %v530_v30  ;;  %543 = vst [vmem:[#allocation2 + $0x48] sm:$0xf0] %v531_v34  ;;  %v482_v36 = vpop.permute.xlu1 %481  ;;  %v410_v23 = vpop.permute.xlu0 %409  ;;  %v369_v30 = vld [vmem:[#allocation9] sm:$0x7] }
 0x143   : > { %470 = vst [vmem:[#allocation2 + $0x10] sm:$0xf0] %v458_v22  ;;  %471 = vst [vmem:[#allocation2 + $0x18] sm:$0xf0] %v459_v10  ;;  %v489_v32 = vsel %vm487_vm3, %v2364_v37, %v482_v36  ;;  %v490_v39 = vsel %vm487_vm3, %v482_v36, %v484_v53  ;;  %v417_v38 = vsel %vm415_vm2, %v2360_v35, %v410_v23  ;;  %v720_v40 = vld [vmem:[#allocation2 + $0xb8] sm:$0xff]  ;;  %v719_v44 = vld [vmem:[#allocation2 + $0xb0] sm:$0xff] }
 0x144   : > { %v418_v33 = vsel %vm415_vm2, %v410_v23, %v412_v54  ;;  %502 = vst [vmem:[#allocation2 + $0x40] sm:$0xf] %v489_v32  ;;  %503 = vst [vmem:[#allocation2 + $0x48] sm:$0xf] %v490_v39  ;;  %v738_v45 = vpack.c.bf16 %v720_v40, %v714_v31  ;;  %v737_v47 = vpack.c.bf16 %v719_v44, %v713_v41 }
 0x145   : > { %430 = vst [vmem:[#allocation2 + $0x10] sm:$0xf] %v417_v38  ;;  %431 = vst [vmem:[#allocation2 + $0x18] sm:$0xf] %v418_v33  ;;  %v2493_v34 = vrot.slane %v369_v30, %v2246_v2  ;;  %v2497_v10 = vrot.slane %v369_v30, %v379_v3 }
 0x146   : > { %v675_v48 = vpop.permute.xlu1 %674  ;;  %v673_v49 = vpop.permute.xlu0 %672  ;;  %874 = vmatprep.subr.bf16.mxu0 %v738_v45 }
 0x147   : > { %v689_v37 = vsel %vm676_vm7, %v675_v48, %v2400_v9  ;;  %v681_v50 = vsel %vm676_vm7, %v673_v49, %v675_v48  ;;  %875 = vmatpush1.bf16.msra.mxu0 %v737_v47  ;;  %v922_v31 = vrot.slane %v2493_v34, %v2246_v2 }
 0x148   : > { %695 = vst [vmem:[#allocation2 + $0xe8] sm:$0xf] %v689_v37  ;;  %694 = vst [vmem:[#allocation2 + $0xe0] sm:$0xf] %v681_v50 }
 0x14a   : > { %v631_v35 = vpop.permute.xlu1 %630  ;;  %v559_v53 = vpop.permute.xlu0 %558 }
 0x14b   : > { %v639_v54 = vsel %vm636_vm5, %v2384_v52, %v631_v35  ;;  %v640_v55 = vsel %vm636_vm5, %v631_v35, %v633_v7  ;;  %v567_v42 = vsel %vm564_vm4, %v2380_v46, %v559_v53  ;;  %v568_v43 = vsel %vm564_vm4, %v559_v53, %v561_v8  ;;  %v706_v57 = vld [vmem:[#allocation2 + $0x48] sm:$0xff]  ;;  %v705_v0 = vld [vmem:[#allocation2 + $0x40] sm:$0xff] }
 0x14c   : > { %v700_v56 = vld [vmem:[#allocation2 + $0x18] sm:$0xff]  ;;  %v699_v9 = vld [vmem:[#allocation2 + $0x10] sm:$0xff]  ;;  %v648_v58 = vrot.slane %v639_v54, 4  ;;  %v649_v59 = vrot.slane %v640_v55, 4  ;;  %v576_v62 = vrot.slane %v567_v42, 4  ;;  %v577_v63 = vrot.slane %v568_v43, 4 }
 0x14d   : > { %v730_v5 = vpack.c.bf16 %v706_v57, %v700_v56  ;;  %v729_v11 = vpack.c.bf16 %v705_v0, %v699_v9  ;;  %v2519_v54 = vrot.slane %v369_v30, %v383_v4 }
 0x14e   : > { %660 = vst [vmem:[#allocation2 + $0xa0] sm:$0xf0] %v648_v58  ;;  %661 = vst [vmem:[#allocation2 + $0xa8] sm:$0xf0] %v649_v59  ;;  %v671_v52 = vpop.permute.xlu1 %670  ;;  %v599_v7 = vpop.permute.xlu0 %598 }
 0x14f   : > { %588 = vst [vmem:[#allocation2 + $0x70] sm:$0xf0] %v576_v62  ;;  %589 = vst [vmem:[#allocation2 + $0x78] sm:$0xf0] %v577_v63  ;;  %v679_v46 = vsel %vm676_vm7, %v2406_v12, %v671_v52  ;;  %v680_v8 = vsel %vm676_vm7, %v671_v52, %v673_v49  ;;  %831 = vmatprep.subr.bf16.mxu1 %v730_v5  ;;  %v607_v13 = vsel %vm604_vm6, %v2396_v6, %v599_v7  ;;  %v726_v15 = vld [vmem:[#allocation2 + $0xe8] sm:$0xf] }
 0x150   : > { %v608_v14 = vsel %vm604_vm6, %v599_v7, %v2446_v61  ;;  %v725_v60 = vld [vmem:[#allocation2 + $0xe0] sm:$0xf]  ;;  %692 = vst [vmem:[#allocation2 + $0xd0] sm:$0xf] %v679_v46  ;;  %693 = vst [vmem:[#allocation2 + $0xd8] sm:$0xf] %v680_v8  ;;  %832 = vmatpush1.bf16.msra.mxu1 %v729_v11  ;;  %v744_v16 = vpack.c.bf16 %v726_v15, %v726_v15  ;;  %v930_v58 = vrot.slane %v2519_v54, %v2246_v2 }
 0x151   : > { %620 = vst [vmem:[#allocation2 + $0xa0] sm:$0xf] %v607_v13  ;;  %621 = vst [vmem:[#allocation2 + $0xa8] sm:$0xf] %v608_v14  ;;  %v743_v17 = vpack.c.bf16 %v725_v60, %v725_v60  ;;  %v1283_v7 = vld [vmem:[%s2833_s7] sm:$0xff] }
 0x152   : > { %1647 = vmatprep.subr.msk.bf16.mxu0 %vm771_vm8, %v744_v16 }
 0x153   : > { %v785_v12 = vsel %vm771_vm8, %v743_v17, 0 }
 0x154   : > { %877 = vmatpush1.bf16.msra.mxu0 %v785_v12 }
 0x156   : > { %v712_v6 = vld [vmem:[#allocation2 + $0x78] sm:$0xff]  ;;  %v711_v18 = vld [vmem:[#allocation2 + $0x70] sm:$0xff] }
 0x157   : > { %1648 = vmatmul.mubr.msk.bf16.vlgmr.msra.gmra.mrb[4].mxu0 %vm767_vm9, %v2433_v51  ;;  %v724_v21 = vld [vmem:[#allocation2 + $0xd8] sm:$0xf]  ;;  %v723_v26 = vld [vmem:[#allocation2 + $0xd0] sm:$0xf] }
 0x158   : > { %v718_v61 = vld [vmem:[#allocation2 + $0xa8] sm:$0xff]  ;;  %v717_v19 = vld [vmem:[#allocation2 + $0xa0] sm:$0xff]  ;;  %1398 = vmatprep.mubr.bf16.mxu0 %v2016_v20  ;;  %v742_v27 = vpack.c.bf16 %v724_v21, %v724_v21  ;;  %v741_v28 = vpack.c.bf16 %v723_v26, %v723_v26 }
 0x159   : > { %v736_v24 = vpack.c.bf16 %v718_v61, %v712_v6  ;;  %v735_v25 = vpack.c.bf16 %v717_v19, %v711_v18 }
 0x15a   : > { %v779_v29 = vsel %vm771_vm8, %v741_v28, 0  ;;  %v1284_v28 = vld [vmem:[%s2833_s7 + $0x8] sm:$0xff] }
 0x15b   : > { %833 = vmatprep.subr.bf16.mxu1 %v736_v24 }
 0x15c   : > { %834 = vmatpush1.bf16.msra.mxu1 %v735_v25 }
 0x15d   : > { %1645 = vmatprep.subr.msk.bf16.mxu1 %vm771_vm8, %v742_v27 }
 0x15f   : > { %v765_v22 = vpop.permute.xlu0 %764 }
 0x160   : > { %836 = vmatpush1.bf16.msra.mxu1 %v779_v29 }
 0x163   : > { %1646 = vmatmul.mubr.msk.bf16.vlgmr.msra.gmra.mrb[0].mxu1 %vm767_vm9, %v2433_v51  ;;  %v926_v51 = vrot.slane %v2497_v10, %v2246_v2 }
 0x164   : > { %1355 = vmatprep.mubr.bf16.mxu1 %v2016_v20 }
 0x201   : > { %v824_v36 = vpop.f32.mrb[0].mxu0 }
 0x202   : > { %v825_v23 = vadd.f32 %v824_v36, %v765_v22  ;;  %v826_v32 = vpop.f32.mrb[1].mxu0 }
 0x203   : > { %v827_v39 = vadd.f32 %v826_v32, %v765_v22  ;;  %v828_v38 = vpop.f32.mrb[2].mxu0 }
 0x204   : > { %v913_v33 = vmax.f32 %v825_v23, 0.0  ;;  %v829_v40 = vpop.f32.mrb[3].mxu0 }
 0x205   : > { %v914_v41 = vmax.f32 %v827_v39, 0.0 }
 0x206   : > { %v2503_v44 = vmul.f32 %v922_v31, %v913_v33 }
 0x207   : > { %v2505_v45 = vmul.f32 %v926_v51, %v914_v41 }
 0x208   : > { %1073 = vrot.lane.b32.xlu1 %v2503_v44, %s2012_s21 }
 0x209   : > { %v1745_v3 = vpack.i.bf16 %v2505_v45, %v2503_v44 }
 0x20b   : > { %1756 = vrot.lane.b32.xlu0 %v1745_v3, %s2011_s10 }
 0x20c   : > { %1746 = vrot.lane.b32.xlu1 %v1745_v3, %s2010_s26 }
 0x210   : > { %1751 = vrot.lane.b32.xlu1 %v1745_v3, %s2009_s20 }
 0x214   : > { %1761 = vrot.lane.b32.xlu1 %v1745_v3, %s2008_s23 }
 0x22a   : > { %v906_v47 = vpop.f32.mrb[4].mxu0 }
 0x22b   : > { %v907_v48 = vadd.f32 %v906_v47, %v765_v22  ;;  %v908_v49 = vpop.f32.mrb[5].mxu0 }
 0x22c   : > { %v910_v37 = vpop.f32.mrb[6].mxu0  ;;  %v909_v42 = vadd.f32 %v908_v49, %v765_v22 }
 0x22d   : > { %v917_v50 = vmax.f32 %v907_v48, 0.0  ;;  %v911_v35 = vpop.f32.mrb[7].mxu0 }
 0x22e   : > { %v918_v0 = vmax.f32 %v909_v42, 0.0 }
 0x22f   : > { %v2515_v53 = vmul.f32 %v926_v51, %v917_v50 }
 0x230   : > { %v2529_v4 = vmul.f32 %v930_v58, %v918_v0 }
 0x231   : > { %v1465_v60 = vsub.f32 %v2505_v45, %v2515_v53 }
 0x233   : > { %v1480_v19 = vmul.f32 %v1465_v60, %v1465_v60 }
 0x236   : > { %v865_v55 = vpop.f32.mrb[0].mxu1 }
 0x237   : > { %v866_v43 = vadd.f32 %v865_v55, %v765_v22  ;;  %v867_v56 = vpop.f32.mrb[1].mxu1 }
 0x238   : > { %v868_v57 = vadd.f32 %v867_v56, %v765_v22  ;;  %v869_v9 = vpop.f32.mrb[2].mxu1 }
 0x239   : > { %v915_v59 = vmax.f32 %v866_v43, 0.0  ;;  %v870_v62 = vpop.f32.mrb[3].mxu1 }
 0x23a   : > { %v916_v63 = vmax.f32 %v868_v57, 0.0 }
 0x23b   : > { %v2523_v5 = vmul.f32 %v930_v58, %v915_v59 }
 0x23c   : > { %v2525_v11 = vmul.f32 %v922_v31, %v916_v63 }
 0x23d   : > { %v1765_v1 = vpack.i.bf16 %v2523_v5, %v2505_v45  ;;  %v1785_v2 = vpack.i.bf16 %v2523_v5, %v2529_v4  ;;  %v1466_v61 = vsub.f32 %v2523_v5, %v2529_v4 }
 0x23e   : > { %v1810_v52 = vpack.i.bf16 %v2515_v53, %v2525_v11  ;;  %v1464_v13 = vsub.f32 %v2503_v44, %v2525_v11 }
 0x23f   : > { %1766 = vrot.lane.b32.xlu0 %v1765_v1, %s2012_s21  ;;  %1776 = vrot.lane.b32.xlu1 %v1765_v1, %s2013_s2  ;;  %v1481_v26 = vmul.f32 %v1466_v61, %v1466_v61 }
 0x240   : > { %v1479_v17 = vmul.f32 %v1464_v13, %v1464_v13 }
 0x242   : > { %v1482_v25 = vadd.f32 %v1480_v19, %v1479_v17 }
 0x243   : > { %1771 = vrot.lane.b32.xlu0 %v1765_v1, %s2014_s24  ;;  %1786 = vrot.lane.b32.xlu1 %v1785_v2, %s2009_s20 }
 0x244   : > { %v1483_v27 = vadd.f32 %v1482_v25, %v1481_v26 }
 0x247   : > { %1781 = vrot.lane.b32.xlu0 %v1785_v2, %s2010_s26  ;;  %1796 = vrot.lane.b32.xlu1 %v1785_v2, %s2008_s23 }
 0x24b   : > { %1791 = vrot.lane.b32.xlu0 %v1785_v2, %s2011_s10  ;;  %1135 = vrot.lane.b32.xlu1 %v2503_v44, %s2013_s2 }
 0x24f   : > { %1104 = vrot.lane.b32.xlu0 %v2503_v44, %s2014_s24  ;;  %1170 = vrot.lane.b32.xlu1 %v2523_v5, %s2015_s17 }
 0x253   : > { %1801 = vrot.lane.b32.xlu0 %v1745_v3, %s2015_s17  ;;  %1811 = vrot.lane.b32.xlu1 %v1810_v52, %s2009_s20  ;;  %s1937_s20 = sshll.u32 %s2017_s9, 4  ;;  %s1938_s20 = int_to_ptr.vmem [resolvable:$false] %s1937_s20 }
 0x257   : > { %1806 = vrot.lane.b32.xlu0 %v1810_v52, %s2010_s26  ;;  %1821 = vrot.lane.b32.xlu1 %v1810_v52, %s2008_s23  ;;  %s1939_s26 = scalar_lea.vmem %s1938_s20, 64 }
 0x25b   : > { %1816 = vrot.lane.b32.xlu0 %v1810_v52, %s2011_s10  ;;  %1836 = vrot.lane.b32.xlu1 %v1810_v52, %s2013_s2 }
 0x25f   : > { %1826 = vrot.lane.b32.xlu0 %v1810_v52, %s2012_s21  ;;  %1083 = vrot.lane.b32.xlu1 %v2529_v4, %s2012_s21  ;;  %s1641_s21 = sshll.u32 %s2229_s3, 1 }
 0x263   : > { %1831 = vrot.lane.b32.xlu0 %v1810_v52, %s2014_s24  ;;  %1145 = vrot.lane.b32.xlu1 %v2529_v4, %s2013_s2 }
 0x267   : > { %1114 = vrot.lane.b32.xlu0 %v2529_v4, %s2014_s24  ;;  %1176 = vrot.lane.b32.xlu1 %v2529_v4, %s2015_s17  ;;  %s2767_s24 = scalar_lea.vmem [#allocation10], %s1641_s21 }
 0x26b   : > { %1841 = vrot.lane.b32.xlu0 %v1810_v52, %s2015_s17  ;;  %1292 = vperm.xlu1 %1845, %v1284_v28   ;;  %s1531_s17 = sshll.u32 %s2767_s24, 4  ;;  %s2778_s17 = int_to_ptr.vmem [resolvable:$true] %s1531_s17 }
 0x26c   : > { %s1933_s23 = scalar_lea.vmem %s2778_s17, 32  ;;  %p1940_p11 = scmp.lt.s32.totalorder %s2778_s17, %s1938_s20 }
 0x26d   : > { %p1934_p1 = scmp.ne.s32.totalorder %s2778_s17, %s1933_s23  ;;  %p1941_p3 = scmp.lt.s32.totalorder %s1939_s26, %s1933_s23 }
 0x26f   : > { %1287 = vperm.xlu0 %1744, %v1283_v7   ;;  %p1935_p4 = pnand %p1934_p1, %p2183_p6  ;;  %p1942_p7 = por %p1941_p3, %p1940_p11 }
 0x271   : > { %p1936_p8 = pneg %p1935_p4 }
 0x273   : > { %p1943_p10 = pnand %p1942_p7, %p1936_p8 }
 0x27a   : > { %v2568_v46 = vpop.permute.xlu1 %1073 }
 0x27d   : > { %v2581_v29 = vpop.permute.xlu0 %1756 }
 0x27e   : > { %v1747_v8 = vpop.permute.xlu1 %1746  ;;  %v1759_v32 = vunpack.i.h.bf16 %v2581_v29  ;;  %v1758_v39 = vunpack.i.l.bf16 %v2581_v29 }
 0x27f   : > { %v1749_v14 = vunpack.i.h.bf16 %v1747_v8  ;;  %v1748_v15 = vunpack.i.l.bf16 %v1747_v8 }
 0x280   : > { %v1018_v49 = vsel %vm487_vm3, %v1758_v39, %v1759_v32 }
 0x281   : > { %v956_v18 = vsel %vm415_vm2, %v1748_v15, %v1749_v14 }
 0x282   : > { %v1752_v16 = vpop.permute.xlu1 %1751 }
 0x283   : > { %v1754_v12 = vunpack.i.h.bf16 %v1752_v16  ;;  %v1753_v6 = vunpack.i.l.bf16 %v1752_v16 }
 0x285   : > { %v987_v21 = vsel %vm447_vm1, %v1753_v6, %v1754_v12 }
 0x286   : > { %v1254_v24 = vpack.c.bf16 %v987_v21, %v956_v18  ;;  %v2583_v30 = vpop.permute.xlu1 %1761 }
 0x287   : > { %v1764_v51 = vunpack.i.h.bf16 %v2583_v30  ;;  %v1763_v38 = vunpack.i.l.bf16 %v2583_v30 }
 0x288   : > { %1323 = vmatprep.subr.bf16.mxu1 %v1254_v24 }
 0x289   : > { %v1049_v55 = vsel %vm519_vm0, %v1763_v38, %v1764_v51 }
 0x28a   : > { %v1260_v0 = vpack.c.bf16 %v1049_v55, %v1018_v49 }
 0x28e   : > { %1484 = vadd.xlane.f32.xlu0 %v1483_v27 }
 0x2b1   : > { %v2585_v22 = vpop.permute.xlu0 %1766  ;;  %v2587_v36 = vpop.permute.xlu1 %1776 }
 0x2b2   : > { %v1769_v37 = vunpack.i.h.bf16 %v2585_v22  ;;  %v1768_v50 = vunpack.i.l.bf16 %v2585_v22  ;;  %v1779_v13 = vunpack.i.h.bf16 %v2587_v36 }
 0x2b4   : > { %v1086_v52 = vsel %vm564_vm4, %v1768_v50, %v1769_v37  ;;  %v1085_v17 = vsel %vm564_vm4, %v2568_v46, %v1768_v50 }
 0x2b5   : > { %v2589_v23 = vpop.permute.xlu0 %1771  ;;  %v2591_v31 = vpop.permute.xlu1 %1786  ;;  %v1265_v18 = vpack.c.bf16 %v1085_v17, %v2503_v44 }
 0x2b6   : > { %v1789_v33 = vunpack.i.h.bf16 %v2591_v31  ;;  %v1788_v40 = vunpack.i.l.bf16 %v2591_v31  ;;  %v1774_v1 = vunpack.i.h.bf16 %v2589_v23  ;;  %v1773_v2 = vunpack.i.l.bf16 %v2589_v23  ;;  %v2705_v31 = vld [vmem:[%s2832_s6] sm:$0xff]  }
 0x2b8   : > { %v2613_v35 = vsel %vm447_vm1, %v1754_v12, %v1789_v33  ;;  %v998_v42 = vsel %vm447_vm1, %v1788_v40, %v1753_v6  ;;  %v1266_v12 = vpack.c.bf16 %v1086_v52, %v2505_v45  ;;  %v1117_v6 = vsel %vm604_vm6, %v1773_v2, %v1774_v1 }
 0x2b9   : > { %v2599_v41 = vpop.permute.xlu0 %1781  ;;  %v2601_v3 = vpop.permute.xlu1 %1796 }
 0x2ba   : > { %v1784_v47 = vunpack.i.h.bf16 %v2599_v41  ;;  %v1783_v48 = vunpack.i.l.bf16 %v2599_v41  ;;  %v1798_v57 = vunpack.i.l.bf16 %v2601_v3  ;;  %v1799_v50 = vunpack.i.h.bf16 %v2601_v3 }
 0x2bc   : > { %v2624_v43 = vsel %vm415_vm2, %v1749_v14, %v1784_v47  ;;  %v967_v56 = vsel %vm415_vm2, %v1783_v48, %v1748_v15  ;;  %v1060_v7 = vsel %vm519_vm0, %v1798_v57, %v1763_v38  ;;  %v1778_v14 = vunpack.i.l.bf16 %v2587_v36 }
 0x2bd   : > { %v1253_v9 = vpack.c.bf16 %v998_v42, %v967_v56  ;;  %v1255_v58 = vpack.c.bf16 %v2613_v35, %v2624_v43  ;;  %v2632_v59 = vpop.permute.xlu0 %1791  ;;  %v2634_v62 = vpop.permute.xlu1 %1135 }
 0x2be   : > { %v1793_v63 = vunpack.i.l.bf16 %v2632_v59  ;;  %v1148_v21 = vsel %vm636_vm5, %v1778_v14, %v1779_v13  ;;  %v1794_v27 = vunpack.i.h.bf16 %v2632_v59  ;;  %v1147_v44 = vsel %vm636_vm5, %v2634_v62, %v1778_v14 }
 0x2bf   : > { %1324 = vmatpush1.bf16.msra.mxu1 %v1253_v9  ;;  %v1272_v26 = vpack.c.bf16 %v1148_v21, %v1117_v6 }
 0x2c0   : > { %v1029_v8 = vsel %vm487_vm3, %v1793_v63, %v1758_v39  ;;  %1325 = vmatprep.subr.bf16.mxu1 %v1260_v0 }
 0x2c1   : > { %v1259_v15 = vpack.c.bf16 %v1060_v7, %v1029_v8  ;;  %v2650_v60 = vpop.permute.xlu0 %1104  ;;  %v2652_v16 = vpop.permute.xlu1 %1170  ;;  %v1019_v7 = vsel %vm487_vm3, %v1759_v32, %v1794_v27  ;;  %v1050_v32 = vsel %vm519_vm0, %v1764_v51, %v1799_v50 }
 0x2c2   : > { %v1116_v24 = vsel %vm604_vm6, %v2650_v60, %v1773_v2  ;;  %v1261_v30 = vpack.c.bf16 %v1050_v32, %v1019_v7 }
 0x2c3   : > { %1326 = vmatpush1.bf16.msra.mxu1 %v1259_v15  ;;  %v1271_v55 = vpack.c.bf16 %v1147_v44, %v1116_v24 }
 0x2c4   : > { %1327 = vmatprep.subr.bf16.mxu1 %v1266_v12 }
 0x2c5   : > { %v2661_v61 = vpop.permute.xlu0 %1801  ;;  %v1812_v19 = vpop.permute.xlu1 %1811 }
 0x2c6   : > { %v1804_v45 = vunpack.i.h.bf16 %v2661_v61  ;;  %v1803_v25 = vunpack.i.l.bf16 %v2661_v61  ;;  %v1813_v28 = vunpack.i.l.bf16 %v1812_v19  ;;  %v1814_v38 = vunpack.i.h.bf16 %v1812_v19 }
 0x2c7   : > { %1328 = vmatpush1.bf16.msra.mxu1 %v1265_v18 }
 0x2c8   : > { %v1179_v39 = vsel %vm676_vm7, %v1804_v45, %v2652_v16  ;;  %1329 = vmatprep.subr.bf16.mxu1 %v1272_v26  ;;  %v1178_v49 = vsel %vm676_vm7, %v1803_v25, %v1804_v45  ;;  %v989_v8 = vsel %vm447_vm1, %v1789_v33, %v1813_v28  ;;  %v991_v29 = vsel %vm447_vm1, %v1814_v38, %v1788_v40 }
 0x2c9   : > { %v1278_v42 = vpack.c.bf16 %v1179_v39, %v1179_v39  ;;  %v1807_v56 = vpop.permute.xlu0 %1806  ;;  %v1822_v9 = vpop.permute.xlu1 %1821  ;;  %v1277_v52 = vpack.c.bf16 %v1178_v49, %v1178_v49  ;;  %v990_v51 = vsel %vm447_vm1, %v1813_v28, %v1814_v38 }
 0x2ca   : > { %v1809_v0 = vunpack.i.h.bf16 %v1807_v56  ;;  %v1808_v2 = vunpack.i.l.bf16 %v1807_v56  ;;  %v1823_v14 = vunpack.i.l.bf16 %v1822_v9  ;;  %v1824_v33 = vunpack.i.h.bf16 %v1822_v9 }
 0x2cb   : > { %1330 = vmatpush1.bf16.msra.mxu1 %v1271_v55 }
 0x2cc   : > { %1650 = vmatprep.subr.msk.bf16.mxu1 %vm1304_vm10, %v1278_v42  ;;  %v958_v15 = vsel %vm415_vm2, %v1784_v47, %v1808_v2  ;;  %v960_v17 = vsel %vm415_vm2, %v1809_v0, %v1783_v48  ;;  %v959_v47 = vsel %vm415_vm2, %v1808_v2, %v1809_v0  ;;  %v1306_v48 = vsel %vm1304_vm10, %v1277_v52, 0 }
 0x2cd   : > { %v1817_v12 = vpop.permute.xlu0 %1816  ;;  %v2698_v6 = vpop.permute.xlu1 %1836  ;;  %v1256_v18 = vpack.c.bf16 %v989_v8, %v958_v15  ;;  %v1258_v19 = vpack.c.bf16 %v991_v29, %v960_v17  ;;  %v1051_v24 = vsel %vm519_vm0, %v1799_v50, %v1823_v14  ;;  %v1257_v45 = vpack.c.bf16 %v990_v51, %v959_v47 }
 0x2ce   : > { %v1819_v21 = vunpack.i.h.bf16 %v1817_v12  ;;  %v1818_v41 = vunpack.i.l.bf16 %v1817_v12  ;;  %v1053_v28 = vsel %vm519_vm0, %v1824_v33, %v1798_v57  ;;  %v1838_v38 = vunpack.i.l.bf16 %v2698_v6 }
 0x2cf   : > { %1332 = vmatpush1.bf16.msra.mxu1 %v1306_v48  ;;  %1366 = vmatprep.subr.bf16.mxu0 %v1256_v18  ;;  %v1052_v59 = vsel %vm519_vm0, %v1823_v14, %v1824_v33  ;;  %v1839_v3 = vunpack.i.h.bf16 %v2698_v6 }
 0x2d0   : > { %1367 = vmatpush1.bf16.msra.mxu0 %v1255_v58  ;;  %1409 = vmatprep.subr.bf16.mxu1 %v1258_v19  ;;  %v1020_v40 = vsel %vm487_vm3, %v1794_v27, %v1818_v41  ;;  %v1022_v49 = vsel %vm487_vm3, %v1819_v21, %v1793_v63  ;;  %v1021_v35 = vsel %vm487_vm3, %v1818_v41, %v1819_v21 }
 0x2d1   : > { %v1827_v26 = vpop.permute.xlu0 %1826  ;;  %v1084_v44 = vpop.permute.xlu1 %1083  ;;  %v1262_v39 = vpack.c.bf16 %v1051_v24, %v1020_v40  ;;  %v1264_v27 = vpack.c.bf16 %v1053_v28, %v1022_v49  ;;  %v1263_v55 = vpack.c.bf16 %v1052_v59, %v1021_v35 }
 0x2d2   : > { %v1829_v43 = vunpack.i.h.bf16 %v1827_v26  ;;  %v1828_v58 = vunpack.i.l.bf16 %v1827_v26  ;;  %1651 = vmatmul.mubr.msk.bf16.vlgmr.msra.gmra.mrb[4].mxu1 %vm1300_vm11, %v2705_v31  ;;  %v1097_v50 = vsel %vm564_vm4, %v1084_v44, %v2568_v46 }
 0x2d3   : > { %1368 = vmatprep.subr.bf16.mxu0 %v1262_v39  ;;  %1410 = vmatpush1.bf16.msra.mxu1 %v1257_v45  ;;  %v1270_v2 = vpack.c.bf16 %v1097_v50, %v2529_v4 }
 0x2d4   : > { %v1087_v57 = vsel %vm564_vm4, %v1769_v37, %v1828_v58  ;;  %1369 = vmatpush1.bf16.msra.mxu0 %v1261_v30  ;;  %1411 = vmatprep.subr.bf16.mxu1 %v1264_v27  ;;  %v1088_v63 = vsel %vm564_vm4, %v1828_v58, %v1829_v43  ;;  %v1089_v0 = vsel %vm564_vm4, %v1829_v43, %v1084_v44 }
 0x2d5   : > { %v1267_v42 = vpack.c.bf16 %v1087_v57, %v2523_v5  ;;  %v1832_v56 = vpop.permute.xlu0 %1831  ;;  %v1146_v9 = vpop.permute.xlu1 %1145  ;;  %v1268_v46 = vpack.c.bf16 %v1088_v63, %v2525_v11  ;;  %1441 = vmatprep.mubr.bf16.mxu1 %v2016_v20  ;;  %v1149_v37 = vsel %vm636_vm5, %v1779_v13, %v1838_v38  ;;  %v1150_v11 = vsel %vm636_vm5, %v1838_v38, %v1839_v3 }
 0x2d6   : > { %v1834_v22 = vunpack.i.h.bf16 %v1832_v56  ;;  %v1833_v52 = vunpack.i.l.bf16 %v1832_v56  ;;  %v1269_v4 = vpack.c.bf16 %v1089_v0, %v2515_v53  ;;  %v1159_v13 = vsel %vm636_vm5, %v1146_v9, %v2634_v62 }
 0x2d7   : > { %1370 = vmatprep.subr.bf16.mxu0 %v1268_v46  ;;  %1412 = vmatpush1.bf16.msra.mxu1 %v1263_v55  ;;  %v1151_v53 = vsel %vm636_vm5, %v1839_v3, %v1146_v9 }
 0x2d8   : > { %v1118_v5 = vsel %vm604_vm6, %v1774_v1, %v1833_v52  ;;  %1371 = vmatpush1.bf16.msra.mxu0 %v1267_v42  ;;  %1413 = vmatprep.subr.bf16.mxu1 %v1270_v2  ;;  %v1119_v20 = vsel %vm604_vm6, %v1833_v52, %v1834_v22 }
 0x2d9   : > { %v1273_v7 = vpack.c.bf16 %v1149_v37, %v1118_v5  ;;  %v1115_v8 = vpop.permute.xlu0 %1114  ;;  %v1177_v14 = vpop.permute.xlu1 %1176  ;;  %v1274_v36 = vpack.c.bf16 %v1150_v11, %v1119_v20 }
 0x2da   : > { %v1120_v15 = vsel %vm604_vm6, %v1834_v22, %v1115_v8  ;;  %v1128_v23 = vsel %vm604_vm6, %v1115_v8, %v2650_v60  ;;  %v1190_v17 = vsel %vm676_vm7, %v1177_v14, %v1803_v25 }
 0x2db   : > { %v1276_v1 = vpack.c.bf16 %v1159_v13, %v1128_v23  ;;  %1372 = vmatprep.subr.bf16.mxu0 %v1274_v36  ;;  %1414 = vmatpush1.bf16.msra.mxu1 %v1269_v4  ;;  %v1275_v29 = vpack.c.bf16 %v1151_v53, %v1120_v15  ;;  %v1282_v33 = vpack.c.bf16 %v1190_v17, %v1190_v17 }
 0x2dc   : > { %1373 = vmatpush1.bf16.msra.mxu0 %v1273_v7 }
 0x2dd   : > { %v1842_v32 = vpop.permute.xlu0 %1841  ;;  %1415 = vmatprep.subr.bf16.mxu1 %v1276_v1 }
 0x2de   : > { %v1844_v62 = vunpack.i.h.bf16 %v1842_v32  ;;  %v1843_v12 = vunpack.i.l.bf16 %v1842_v32 }
 0x2df   : > { %1416 = vmatpush1.bf16.msra.mxu1 %v1275_v29 }
 0x2e0   : > { %v1181_v6 = vsel %vm676_vm7, %v1843_v12, %v1844_v62  ;;  %1654 = vmatprep.subr.msk.bf16.mxu1 %vm1304_vm10, %v1282_v33  ;;  %v1180_v60 = vsel %vm676_vm7, %v2652_v16, %v1843_v12  ;;  %v1182_v61 = vsel %vm676_vm7, %v1844_v62, %v1177_v14 }
 0x2e1   : > { %v1280_v25 = vpack.c.bf16 %v1181_v6, %v1181_v6  ;;  %v1279_v18 = vpack.c.bf16 %v1180_v60, %v1180_v60  ;;  %v1281_v19 = vpack.c.bf16 %v1182_v61, %v1182_v61 }
 0x2e3   : > { %1652 = vmatprep.subr.msk.bf16.mxu0 %vm1304_vm10, %v1280_v25  ;;  %v1312_v47 = vsel %vm1304_vm10, %v1279_v18, 0  ;;  %v1318_v21 = vsel %vm1304_vm10, %v1281_v19, 0 }
 0x2e4   : > { %1375 = vmatpush1.bf16.msra.mxu0 %v1312_v47  ;;  %1418 = vmatpush1.bf16.msra.mxu1 %v1318_v21 }
 0x2e7   : > { %1653 = vmatmul.mubr.msk.bf16.vlgmr.msra.gmra.mrb[8].mxu0 %vm1300_vm11, %v2705_v31  ;;  %1655 = vmatmul.mubr.msk.bf16.vlgmr.msra.gmra.mrb[8].mxu1 %vm1300_vm11, %v2705_v31 }
 0x2ea   : > { %v1293_v28 = vpop.permute.xlu1 %1292 }
 0x2ee   : > { %v1288_v16 = vpop.permute.xlu0 %1287 }
 0x31b   : > { %v1485_v41 = vpop.xlane.xlu0 %1484 }
 0x31c   : > { %v1486_v48 = vrot.slane %v1485_v41, 4 }
 0x31e   : > { %v1487_v30 = vadd.f32 %v1486_v48, %v1485_v41 }
 0x320   : > { %v1488_v51 = vrot.slane %v1487_v30, 2 }
 0x322   : > { %v1489_v40 = vadd.f32 %v1488_v51, %v1487_v30 }
 0x324   : > { %v1490_v24 = vrot.slane %v1489_v40, 1 }
 0x326   : > { %v1491_v45 = vadd.f32 %v1490_v24, %v1489_v40 }
 0x328   : > { %1664 = vpush %v1491_v45 }
 0x359   : > { %s1665_s2 = spop %1664 }
 0x35a   : > { %v1513_v26 = vstv %s1665_s2 }
 0x35b   : > { %1514 = vst [vmem:[%s2767_s24] sm:$0x1] %v1513_v26 }
 0x3a5   : > { %v1357_v44 = vpop.f32.mrb[4].mxu1 }
 0x3a6   : > { %v1359_v39 = vpop.f32.mrb[5].mxu1  ;;  %v1358_v35 = vadd.f32 %v1357_v44, %v1288_v16 }
 0x3a7   : > { %v1361_v49 = vpop.f32.mrb[6].mxu1  ;;  %v1360_v43 = vadd.f32 %v1359_v39, %v1288_v16 }
 0x3a8   : > { %v1363_v31 = vpop.f32.mrb[7].mxu1  ;;  %v1362_v58 = vadd.f32 %v1361_v49, %v1293_v28  ;;  %v1452_v50 = vmax.f32 %v1358_v35, 0.0 }
 0x3a9   : > { %v1364_v59 = vadd.f32 %v1363_v31, %v1293_v28  ;;  %v1453_v42 = vmax.f32 %v1360_v43, 0.0 }
 0x3aa   : > { %v1458_v2 = vmax.f32 %v1362_v58, 0.0 }
 0x3ab   : > { %v1459_v36 = vmax.f32 %v1364_v59, 0.0 }
 0x3ba   : > { %v1400_v27 = vpop.f32.mrb[8].mxu0  ;;  %v1443_v38 = vpop.f32.mrb[8].mxu1 }
 0x3bb   : > { %v1401_v3 = vadd.f32 %v1400_v27, %v1288_v16  ;;  %v1444_v57 = vadd.f32 %v1443_v38, %v1288_v16  ;;  %v1402_v63 = vpop.f32.mrb[9].mxu0  ;;  %v1445_v55 = vpop.f32.mrb[9].mxu1 }
 0x3bc   : > { %v1403_v56 = vadd.f32 %v1402_v63, %v1288_v16  ;;  %v1446_v9 = vadd.f32 %v1445_v55, %v1288_v16  ;;  %v1404_v46 = vpop.f32.mrb[10].mxu0  ;;  %v1447_v0 = vpop.f32.mrb[10].mxu1 }
 0x3bd   : > { %v1454_v22 = vmax.f32 %v1401_v3, 0.0  ;;  %v1456_v52 = vmax.f32 %v1444_v57, 0.0  ;;  %v1405_v37 = vadd.f32 %v1404_v46, %v1293_v28  ;;  %v1448_v5 = vadd.f32 %v1447_v0, %v1293_v28  ;;  %v1406_v20 = vpop.f32.mrb[11].mxu0  ;;  %v1449_v11 = vpop.f32.mrb[11].mxu1 }
 0x3be   : > { %v1455_v4 = vmax.f32 %v1403_v56, 0.0  ;;  %v1457_v7 = vmax.f32 %v1446_v9, 0.0  ;;  %v1407_v8 = vadd.f32 %v1406_v20, %v1293_v28  ;;  %v1450_v14 = vadd.f32 %v1449_v11, %v1293_v28 }
 0x3bf   : > { %v1468_v13 = vsub.f32 %v1453_v42, %v1456_v52  ;;  %v1460_v15 = vmax.f32 %v1405_v37, 0.0  ;;  %v1462_v23 = vmax.f32 %v1448_v5, 0.0 }
 0x3c0   : > { %v1467_v1 = vsub.f32 %v1452_v50, %v1455_v4  ;;  %v1469_v17 = vsub.f32 %v1454_v22, %v1457_v7  ;;  %v1461_v53 = vmax.f32 %v1407_v8, 0.0  ;;  %v1463_v29 = vmax.f32 %v1450_v14, 0.0 }
 0x3c1   : > { %v1474_v32 = vmul.f32 %v1468_v13, %v2497_v10  ;;  %v1471_v33 = vsub.f32 %v1459_v36, %v1462_v23 }
 0x3c2   : > { %v1473_v62 = vmul.f32 %v1467_v1, %v2493_v34  ;;  %v1475_v12 = vmul.f32 %v1469_v17, %v2519_v54  ;;  %v1470_v6 = vsub.f32 %v1458_v2, %v1461_v53  ;;  %v1472_v60 = vsub.f32 %v1460_v15, %v1463_v29 }
 0x3c3   : > { %v1494_v61 = vmul.f32 %v1474_v32, %v1474_v32  ;;  %v1477_v21 = vmul.f32 %v1471_v33, %v2497_v10 }
 0x3c4   : > { %v1493_v25 = vmul.f32 %v1473_v62, %v1473_v62  ;;  %v1476_v18 = vmul.f32 %v1470_v6, %v2493_v34  ;;  %v1495_v47 = vmul.f32 %v1475_v12, %v1475_v12  ;;  %v1478_v41 = vmul.f32 %v1472_v60, %v2519_v54 }
 0x3c5   : > { %v1497_v30 = vmul.f32 %v1477_v21, %v1477_v21 }
 0x3c6   : > { %v1499_v19 = vadd.f32 %v1494_v61, %v1493_v25  ;;  %v1496_v16 = vmul.f32 %v1476_v18, %v1476_v18  ;;  %v1498_v40 = vmul.f32 %v1478_v41, %v1478_v41 }
 0x3c8   : > { %v1500_v48 = vadd.f32 %v1499_v19, %v1495_v47 }
 0x3ca   : > { %v1501_v51 = vadd.f32 %v1500_v48, %v1496_v16 }
 0x3cc   : > { %v1502_v24 = vadd.f32 %v1501_v51, %v1497_v30 }
 0x3ce   : > { %v1503_v45 = vadd.f32 %v1502_v24, %v1498_v40 }
 0x3d0   : > { %1504 = vadd.xlane.f32.xlu1 %v1503_v45 }
 0x45d   : > { %v1505_v26 = vpop.xlane.xlu1 %1504 }
 0x45e   : > { %v1506_v34 = vrot.slane %v1505_v26, 4 }
 0x460   : > { %v1507_v44 = vadd.f32 %v1506_v34, %v1505_v26 }
 0x462   : > { %v1508_v39 = vrot.slane %v1507_v44, 2 }
 0x464   : > { %v1509_v10 = vadd.f32 %v1508_v39, %v1507_v44 }
 0x466   : > { %v1510_v49 = vrot.slane %v1509_v10, 1 }
 0x468   : > { %v1511_v31 = vadd.f32 %v1510_v49, %v1509_v10 }
 0x46a   : > { %1666 = vpush %v1511_v31 }
 0x49b   : > { %s1667_s13 = spop %1666 }
 0x49c   : > { %v1515_v54 = vstv %s1667_s13 }
 0x49d   : > { %1516 = vst [vmem:[%s2767_s24 + $0x1] sm:$0x1] %v1515_v54 }
 0x49e   : > { %1946 = shalt.err (!%p1943_p10)
}
 0x49f   : > { %s1947_s3 = scalar_lea.hbm %s2783_s15, 32  ;;  %s1951_s2 = scalar_lea.hbm %s2834_s8, 64 }
 0x4a0   : > { %p1948_p13 = scmp.ne.s32.totalorder %s2783_s15, %s1947_s3  ;;  %p1952_p9 = scmp.lt.u32.totalorder %s2783_s15, %s2834_s8 }
 0x4a1   : > { %p1953_p12 = scmp.lt.u32.totalorder %s1951_s2, %s1947_s3  ;;  %p1955_p1 = scmp.lt.u32.totalorder %s1947_s3, %s2783_s15 }
 0x4a2   : > { %p1949_p5 = pnand %p1948_p13, %p2183_p6 }
 0x4a3   : > { %p1954_p2 = por %p1953_p12, %p1952_p9 }
 0x4a4   : > { %p1950_p0 = pneg %p1949_p5 }
 0x4a5   : > { %p1956_p4 = por %p1955_p1, %p1954_p2 }
 0x4a7   : > { %p1957_p8 = pnand %p1956_p4, %p1950_p0 }
 0x4a9   : > { %1960 = shalt.err (!%p1957_p8)
}
 0x4aa   : > { %1678 = dma.vmem_to_hbm [thread:$0]  (%p2183_p6), %s2778_s17, 32, %s2783_s15, %s1518_s22  }
 0x4ab PF: > { %s1543_s13 = sand.u32 1, %s1991_s27   ;;  %p2853_p11 = scmp.ne.s32.totalorder %s2841_s12, 0 }
 0x4ac   : > { %p2854_p3 = scmp.ge.s32.totalorder %s2003_s30, 2  ;;  %s1544_s11 = scalar_lea.sflag [#allocation6], %s1543_s13 }
 0x4ae   : > { %p1692_p7 = pnand %p2854_p3, %p2853_p11 }
 0x4b0   : > { %1986 = dma.done.wait (!%p1692_p7), %s1544_s11, 32  }
 0x4b1   : > { %1988 = vsyncadd (!%p1692_p7), %s1544_s11, 4294967264  ;;  %p22_p10 = scmp.ge.s32.totalorder %s2119_s19, 4   ;;  %s2855_s27 = smov %s1995_s28 }
 0x4b2   : > { %s2856_s28 = smov %s1999_s29  ;;  %s2857_s29 = smov %s2179_s18 }
 0x4b3   : > { %s2858_s30 = smov %s2119_s19  ;;  %24 = sbr.rel (!%p22_p10) target bundleno = 9 (0x9), region = 108 }
 0x4ba   :  { %1549 = vsyncpa [#allocation5], 1 }
 0x4bb   :  { %1551 = vsyncpa [#allocation5 + $0x1], 1 }
 0x4bc   :  { %1552 = vsyncpa [#allocation8], 1 }
 0x4bd   :  { %1553 = vsyncpa [#allocation6], 1 }
 0x4be   :  { %1555 = vsyncpa [#allocation6 + $0x1], 1 }

</bundles_post_ra>
